<compile_context>
chip_gen: v7x
topology: tpu7x:2x2x1
jax: 0.10.0
libtpu: 0.0.40
codegen_flags: <defaults>
</compile_context>

<pallas_src>
import functools

import jax
import jax.numpy as jnp
from jax.experimental import pallas as pl
from jax.experimental.pallas import tpu as pltpu

_LANES = 128
_LANE_WIDTH_CANDIDATES = (8192, 4096, 2048, 1024, 512, 256, 128)
_SMALL_FALLBACK_BYTES = 512 * 1024   # below this, XLA's fused pointwise op wins
_UNSET = object()


def _round_up(x, m):
    return ((x + m - 1) // m) * m


def _sublanes_for(dtype):
    # Native packed sublane granule: 8 rows for 4-byte, 16 for 2-byte, 32 for 1-byte.
    itemsize = jnp.dtype(dtype).itemsize
    return max(8, 32 // max(1, itemsize))


@functools.lru_cache(maxsize=None)
def _chip_config():
    """Generation-aware block-size / VMEM-limit / TensorCore-count defaults."""
    try:
        vmem_capacity = int(pltpu.get_tpu_info().vmem_capacity_bytes)
    except Exception:
        # Unknown chip: conservative settings that are legal everywhere.
        return {"target_block_bytes": 4 << 20, "vmem_limit_bytes": 32 << 20, "num_tc": 1}
    if vmem_capacity <= (96 << 20):
        # v7x-class: 64 MiB VMEM per TensorCore, 2 TensorCores per chip.
        # 8 MiB block x (in+out) x double-buffer = 32 MiB < 40 MiB limit < 64 MiB.
        return {"target_block_bytes": 8 << 20, "vmem_limit_bytes": 40 << 20, "num_tc": 2}
    # v5e / v6e: 128 MiB VMEM, single TensorCore per chip.
    return {"target_block_bytes": 8 << 20, "vmem_limit_bytes": 48 << 20, "num_tc": 1}


def _lambda_kernel(x_ref, o_ref, *, f):
    # Elementwise application of the wrapped closure on the whole VMEM tile.
    o_ref[...] = f(x_ref[...]).astype(o_ref.dtype)


class PallasLambda:
    """JAX/Pallas equivalent of LPResNet's Lambda(nn.Module)."""

    def __init__(self, f, elementwise=True):
        self.f = f
        # `elementwise=False` forces the plain-JAX path for closures that are
        # shape-preserving but position-dependent (transpose, per-axis norm, ...).
        self.elementwise = elementwise
        self._kernel = functools.partial(_lambda_kernel, f=f)  # stable identity
        self._cache = {}

    # ------------------------------------------------------------------ call
    def __call__(self, x):
        orig_shape = tuple(x.shape)

        # Shape-changing closures (e.g. LPResNet's strided-slice + channel-pad
        # shortcut) are not elementwise -> plain JAX.
        out_aval = jax.eval_shape(self.f, jax.ShapeDtypeStruct(x.shape, x.dtype))
        if (not self.elementwise
                or not isinstance(out_aval, jax.ShapeDtypeStruct)
                or tuple(out_aval.shape) != orig_shape):
            return self.f(x)
        out_dtype = out_aval.dtype

        n = x.size
        itemsize = max(jnp.dtype(x.dtype).itemsize, jnp.dtype(out_dtype).itemsize)
        # Small tensors: pallas_call + layout plumbing costs more than the op.
        if n == 0 or n * itemsize < _SMALL_FALLBACK_BYTES:
            return self.f(x)
        # Lane-misaligned sizes: pad/slice would add full extra HBM passes, so
        # the single fused XLA pass is strictly faster.  (Rare for conv tensors.)
        # TODO(synk): a ragged-masked 1-D BlockSpec could keep these on the
        # Pallas path with no extra traffic.
        if n % _LANES != 0:
            return self.f(x)

        key = (orig_shape, jnp.dtype(x.dtype), jnp.dtype(out_dtype))
        run = self._cache.get(key, _UNSET)
        if run is _UNSET:
            run = self._build(orig_shape, jnp.dtype(x.dtype), jnp.dtype(out_dtype))
            self._cache[key] = run
        if run is None:          # closure failed the pointwise probe
            return self.f(x)
        return run(x)

    # ----------------------------------------------------------------- build
    def _build(self, orig_shape, in_dtype, out_dtype):
        cfg = _chip_config()
        n = 1
        for d in orig_shape:
            n *= int(d)
        sublanes = max(_sublanes_for(in_dtype), _sublanes_for(out_dtype))
        itemsize = max(in_dtype.itemsize, out_dtype.itemsize)

        # Lane width: widest candidate dividing n that still leaves enough rows
        # for several balanced grid steps (>= 4 sublane groups), then relax.
        lane_width = _LANES
        for min_rows in (4 * sublanes, sublanes, 1):
            found = False
            for w in _LANE_WIDTH_CANDIDATES:
                if n % w == 0 and (n // w) >= min_rows:
                    lane_width = w
                    found = True
                    break
            if found:
                break
        rows = n // lane_width

        # Probe: the closure must also be shape/dtype-preserving on the 2-D
        # slab; otherwise it is not a pure pointwise map (or captures arrays
        # shaped like the original input) and we leave it to XLA.
        try:
            slab_aval = jax.eval_shape(
                self.f, jax.ShapeDtypeStruct((rows, lane_width), in_dtype))
        except Exception:
            return None
        if (not isinstance(slab_aval, jax.ShapeDtypeStruct)
                or tuple(slab_aval.shape) != (rows, lane_width)
                or slab_aval.dtype != out_dtype):
            return None

        # Row tile: target the per-generation block-byte budget; on dual-TC
        # chips (v7x) force an even, near-balanced number of grid steps so both
        # cores get equal work.  Single-TC chips keep full-size blocks.
        bytes_per_row = lane_width * itemsize
        rows_per_target = max(1, cfg["target_block_bytes"] // bytes_per_row)
        steps = pl.cdiv(rows, rows_per_target)
        num_tc = cfg["num_tc"]
        if num_tc > 1 and rows > sublanes:
            steps = _round_up(max(steps, num_tc), num_tc)
        row_tile = min(rows, _round_up(pl.cdiv(rows, steps), sublanes))

        if row_tile >= rows:
            block = (rows, lane_width)       # single block == full array dims
            grid = (1,)
        else:
            block = (row_tile, lane_width)   # ragged last block masked by Pallas
            grid = (pl.cdiv(rows, row_tile),)

        call = pl.pallas_call(
            self._kernel,
            out_shape=jax.ShapeDtypeStruct((rows, lane_width), out_dtype),
            grid=grid,
            in_specs=[pl.BlockSpec(block, lambda i: (i, 0))],
            out_specs=pl.BlockSpec(block, lambda i: (i, 0)),
            compiler_params=pltpu.CompilerParams(
                dimension_semantics=("parallel",),
                vmem_limit_bytes=cfg["vmem_limit_bytes"],
            ),
        )
        # NOTE: no input_output_aliases — the flattened slab may alias the
        # caller's input buffer, so donating it here would be unsafe.

        def run(x):
            slab = x.reshape(rows, lane_width)
            return call(slab).reshape(orig_shape)

        return jax.jit(run)


if __name__ == "__main__":
    key = jax.random.PRNGKey(0)
    k1, k2 = jax.random.split(key)

    # 1) Small NCHW input consistent with LPResNet's conv-net context.
    #    This size takes the small-tensor fallback path (fused XLA pointwise).
    x_small = jax.random.normal(k1, (2, 4, 16, 16), dtype=jnp.float32)
    f_scale = lambda t: t * 0.5
    lam_small = PallasLambda(f_scale)
    y_small = jax.block_until_ready(lam_small(x_small))
    ref_small = f_scale(x_small)
    assert y_small.shape == ref_small.shape and y_small.dtype == ref_small.dtype
    assert jnp.allclose(y_small, ref_small, atol=1e-6, rtol=1e-6)

    # 2) Activation-sized input (1 MiB) that exercises the Pallas kernel path.
    x_big = jax.random.normal(k2, (2, 32, 64, 64), dtype=jnp.float32)
    f_point = lambda t: jnp.maximum(t, 0.0) * 1.5 + 0.25
    lam_big = PallasLambda(f_point)
    y_big = jax.block_until_ready(lam_big(x_big))
    ref_big = f_point(x_big)
    assert y_big.shape == ref_big.shape and y_big.dtype == ref_big.dtype
    assert jnp.allclose(y_big, ref_big, atol=1e-6, rtol=1e-6)

    # 3) Shape-changing LPResNet shortcut closure (strided slice + channel pad)
    #    -> correctly falls back to plain JAX.
    f_shortcut = lambda t: jnp.pad(t[:, :, ::2, ::2], ((0, 0), (2, 2), (0, 0), (0, 0)))
    lam_sc = PallasLambda(f_shortcut)
    y_sc = jax.block_until_ready(lam_sc(x_small))
    ref_sc = f_shortcut(x_small)
    assert y_sc.shape == ref_sc.shape
    assert jnp.allclose(y_sc, ref_sc)

    print("KERNEL_OK")
</pallas_src>

<mosaic_0001>
module attributes {stable_mosaic.version = 11 : i64} {
  func.func @_lambda_kernel(%arg0: i32, %arg1: memref<32x8192xf32, #tpu.memory_space<vmem>>, %arg2: memref<32x8192xf32, #tpu.memory_space<vmem>>) attributes {dimension_semantics = [#tpu.dimension_semantics<parallel>], iteration_bounds = array<i64: 1>, scalar_prefetch = 0 : i64, scratch_operands = 0 : i64, tpu.core_type = #tpu.core_type<tc>, window_params = [{transform_indices = @transform_0, window_bounds = array<i64: 32, 8192>}, {transform_indices = @transform_1, window_bounds = array<i64: 32, 8192>}]} {
    %c0 = arith.constant 0 : index
    %c0_0 = arith.constant 0 : index
    %0 = vector.load %arg1[%c0, %c0_0] : memref<32x8192xf32, #tpu.memory_space<vmem>>, vector<32x8192xf32>
    %cst = arith.constant 0.000000e+00 : f32
    %1 = vector.broadcast %cst : f32 to vector<32x8192xf32>
    %2 = arith.maximumf %0, %1 : vector<32x8192xf32>
    %cst_1 = arith.constant 1.500000e+00 : f32
    %3 = vector.broadcast %cst_1 : f32 to vector<32x8192xf32>
    %4 = arith.mulf %2, %3 : vector<32x8192xf32>
    %cst_2 = arith.constant 2.500000e-01 : f32
    %5 = vector.broadcast %cst_2 : f32 to vector<32x8192xf32>
    %6 = arith.addf %4, %5 : vector<32x8192xf32>
    %c0_3 = arith.constant 0 : index
    %c0_4 = arith.constant 0 : index
    %7 = vector.load %arg2[%c0_3, %c0_4] : memref<32x8192xf32, #tpu.memory_space<vmem>>, vector<32x8192xf32>
    tpu.vector_store %arg2[%c0_3, %c0_4], %6 {strides = array<i32>} : memref<32x8192xf32, #tpu.memory_space<vmem>>, vector<32x8192xf32>,
    return
  }
  func.func @transform_0(%arg0: i32) -> (i32, i32) {
    %c0_i32 = arith.constant 0 : i32
    %c0_i32_0 = arith.constant 0 : i32
    return %arg0, %c0_i32 : i32, i32
  }
  func.func @transform_1(%arg0: i32) -> (i32, i32) {
    %c0_i32 = arith.constant 0 : i32
    %c0_i32_0 = arith.constant 0 : i32
    return %arg0, %c0_i32 : i32, i32
  }
}

</mosaic_0001>

<bundles_post_ra>
// kernel: run.1
= control target key start
LH: loop header
LB: loop body
LE: loop exit
PB: predicated region body
PF: predicated region fallthrough
CT: control target
= control target key end

     0   :  { %s2838_s0 = inlined_call_operand.vmem [shape: f32[32,8192], index: 0, kind: input, shape index: {}]   ;;  %s2839_s1 = inlined_call_operand.vmem [shape: f32[32,8192], index: 1, kind: output, shape index: {}]  }
   0x1   :  { %v8_v0 = vld [vmem:[%s2838_s0] sm:$0xff]  ;;  %v9_v1 = vld [vmem:[%s2838_s0 + $0x8] sm:$0xff]  ;;  %v10_v2 = vld [vmem:[%s2838_s0 + $0x10] sm:$0xff] }
   0x2   :  { %v264_v3 = vmax.f32 %v8_v0, 0.0  ;;  %v265_v4 = vmax.f32 %v9_v1, 0.0  ;;  %v266_v5 = vmax.f32 %v10_v2, 0.0  ;;  %v11_v6 = vld [vmem:[%s2838_s0 + $0x18] sm:$0xff]  ;;  %v12_v7 = vld [vmem:[%s2838_s0 + $0x20] sm:$0xff]  ;;  %v13_v8 = vld [vmem:[%s2838_s0 + $0x28] sm:$0xff] }
   0x3   :  { %v267_v9 = vmax.f32 %v11_v6, 0.0  ;;  %v268_v10 = vmax.f32 %v12_v7, 0.0  ;;  %v269_v11 = vmax.f32 %v13_v8, 0.0  ;;  %v14_v12 = vld [vmem:[%s2838_s0 + $0x30] sm:$0xff]  ;;  %v15_v13 = vld [vmem:[%s2838_s0 + $0x38] sm:$0xff]  ;;  %v16_v18 = vld [vmem:[%s2838_s0 + $0x40] sm:$0xff] }
   0x4   :  { %v520_v14 = vmul.f32 1.5, %v264_v3  ;;  %v521_v15 = vmul.f32 1.5, %v265_v4  ;;  %v522_v16 = vmul.f32 1.5, %v266_v5  ;;  %v270_v17 = vmax.f32 %v14_v12, 0.0  ;;  %v17_v19 = vld [vmem:[%s2838_s0 + $0x48] sm:$0xff]  ;;  %v18_v24 = vld [vmem:[%s2838_s0 + $0x50] sm:$0xff] }
   0x5   :  { %v523_v20 = vmul.f32 1.5, %v267_v9  ;;  %v524_v21 = vmul.f32 1.5, %v268_v10  ;;  %v525_v22 = vmul.f32 1.5, %v269_v11  ;;  %v271_v23 = vmax.f32 %v15_v13, 0.0  ;;  %v19_v25 = vld [vmem:[%s2838_s0 + $0x58] sm:$0xff]  ;;  %v20_v30 = vld [vmem:[%s2838_s0 + $0x60] sm:$0xff] }
   0x6   :  { %v776_v26 = vadd.f32 0.25, %v520_v14  ;;  %v777_v27 = vadd.f32 0.25, %v521_v15  ;;  %v778_v28 = vadd.f32 0.25, %v522_v16  ;;  %v526_v29 = vmul.f32 1.5, %v270_v17  ;;  %v21_v31 = vld [vmem:[%s2838_s0 + $0x68] sm:$0xff]  ;;  %v22_v36 = vld [vmem:[%s2838_s0 + $0x70] sm:$0xff] }
   0x7   :  { %v779_v32 = vadd.f32 0.25, %v523_v20  ;;  %v780_v33 = vadd.f32 0.25, %v524_v21  ;;  %v781_v34 = vadd.f32 0.25, %v525_v22  ;;  %v527_v35 = vmul.f32 1.5, %v271_v23  ;;  %v23_v41 = vld [vmem:[%s2838_s0 + $0x78] sm:$0xff]  ;;  %v24_v50 = vld [vmem:[%s2838_s0 + $0x80] sm:$0xff] }
   0x8   :  { %1032 = vst [vmem:[%s2839_s1] sm:$0xff] %v776_v26  ;;  %1033 = vst [vmem:[%s2839_s1 + $0x8] sm:$0xff] %v777_v27  ;;  %v782_v37 = vadd.f32 0.25, %v526_v29  ;;  %v272_v38 = vmax.f32 %v16_v18, 0.0  ;;  %v273_v39 = vmax.f32 %v17_v19, 0.0  ;;  %v274_v40 = vmax.f32 %v18_v24, 0.0  ;;  %v25_v51 = vld [vmem:[%s2838_s0 + $0x88] sm:$0xff] }
   0x9   :  { %1034 = vst [vmem:[%s2839_s1 + $0x10] sm:$0xff] %v778_v28  ;;  %1035 = vst [vmem:[%s2839_s1 + $0x18] sm:$0xff] %v779_v32  ;;  %v783_v42 = vadd.f32 0.25, %v527_v35  ;;  %v275_v43 = vmax.f32 %v19_v25, 0.0  ;;  %v276_v44 = vmax.f32 %v20_v30, 0.0  ;;  %v277_v45 = vmax.f32 %v21_v31, 0.0 }
   0xa   :  { %1036 = vst [vmem:[%s2839_s1 + $0x20] sm:$0xff] %v780_v33  ;;  %1037 = vst [vmem:[%s2839_s1 + $0x28] sm:$0xff] %v781_v34  ;;  %v528_v46 = vmul.f32 1.5, %v272_v38  ;;  %v529_v47 = vmul.f32 1.5, %v273_v39  ;;  %v530_v48 = vmul.f32 1.5, %v274_v40  ;;  %v278_v49 = vmax.f32 %v22_v36, 0.0 }
   0xb   :  { %1038 = vst [vmem:[%s2839_s1 + $0x30] sm:$0xff] %v782_v37  ;;  %1039 = vst [vmem:[%s2839_s1 + $0x38] sm:$0xff] %v783_v42  ;;  %v531_v52 = vmul.f32 1.5, %v275_v43  ;;  %v532_v53 = vmul.f32 1.5, %v276_v44  ;;  %v533_v54 = vmul.f32 1.5, %v277_v45  ;;  %v279_v55 = vmax.f32 %v23_v41, 0.0 }
   0xc   :  { %v26_v56 = vld [vmem:[%s2838_s0 + $0x90] sm:$0xff]  ;;  %v27_v57 = vld [vmem:[%s2838_s0 + $0x98] sm:$0xff]  ;;  %v784_v58 = vadd.f32 0.25, %v528_v46  ;;  %v785_v59 = vadd.f32 0.25, %v529_v47  ;;  %v786_v60 = vadd.f32 0.25, %v530_v48  ;;  %v534_v61 = vmul.f32 1.5, %v278_v49 }
   0xd   :  { %v28_v62 = vld [vmem:[%s2838_s0 + $0xa0] sm:$0xff]  ;;  %v29_v63 = vld [vmem:[%s2838_s0 + $0xa8] sm:$0xff]  ;;  %v787_v0 = vadd.f32 0.25, %v531_v52  ;;  %v788_v1 = vadd.f32 0.25, %v532_v53  ;;  %v789_v2 = vadd.f32 0.25, %v533_v54  ;;  %v535_v3 = vmul.f32 1.5, %v279_v55 }
   0xe   :  { %v30_v4 = vld [vmem:[%s2838_s0 + $0xb0] sm:$0xff]  ;;  %1040 = vst [vmem:[%s2839_s1 + $0x40] sm:$0xff] %v784_v58  ;;  %1041 = vst [vmem:[%s2839_s1 + $0x48] sm:$0xff] %v785_v59  ;;  %v790_v5 = vadd.f32 0.25, %v534_v61  ;;  %v280_v6 = vmax.f32 %v24_v50, 0.0  ;;  %v281_v7 = vmax.f32 %v25_v51, 0.0 }
   0xf   :  { %1042 = vst [vmem:[%s2839_s1 + $0x50] sm:$0xff] %v786_v60  ;;  %v282_v8 = vmax.f32 %v26_v56, 0.0  ;;  %v31_v9 = vld [vmem:[%s2838_s0 + $0xb8] sm:$0xff]  ;;  %1043 = vst [vmem:[%s2839_s1 + $0x58] sm:$0xff] %v787_v0  ;;  %v791_v10 = vadd.f32 0.25, %v535_v3  ;;  %v283_v11 = vmax.f32 %v27_v57, 0.0 }
  0x10   :  { %1044 = vst [vmem:[%s2839_s1 + $0x60] sm:$0xff] %v788_v1  ;;  %1045 = vst [vmem:[%s2839_s1 + $0x68] sm:$0xff] %v789_v2  ;;  %v284_v12 = vmax.f32 %v28_v62, 0.0  ;;  %v285_v13 = vmax.f32 %v29_v63, 0.0  ;;  %v536_v14 = vmul.f32 1.5, %v280_v6  ;;  %v537_v15 = vmul.f32 1.5, %v281_v7 }
  0x11   :  { %1046 = vst [vmem:[%s2839_s1 + $0x70] sm:$0xff] %v790_v5  ;;  %v538_v16 = vmul.f32 1.5, %v282_v8  ;;  %v286_v17 = vmax.f32 %v30_v4, 0.0  ;;  %v32_v18 = vld [vmem:[%s2838_s0 + $0xc0] sm:$0xff]  ;;  %v33_v19 = vld [vmem:[%s2838_s0 + $0xc8] sm:$0xff]  ;;  %1047 = vst [vmem:[%s2839_s1 + $0x78] sm:$0xff] %v791_v10 }
  0x12   :  { %v539_v20 = vmul.f32 1.5, %v283_v11  ;;  %v540_v21 = vmul.f32 1.5, %v284_v12  ;;  %v541_v22 = vmul.f32 1.5, %v285_v13  ;;  %v287_v23 = vmax.f32 %v31_v9, 0.0  ;;  %v34_v24 = vld [vmem:[%s2838_s0 + $0xd0] sm:$0xff]  ;;  %v35_v25 = vld [vmem:[%s2838_s0 + $0xd8] sm:$0xff] }
  0x13   :  { %v792_v26 = vadd.f32 0.25, %v536_v14  ;;  %v793_v27 = vadd.f32 0.25, %v537_v15  ;;  %v794_v28 = vadd.f32 0.25, %v538_v16  ;;  %v542_v29 = vmul.f32 1.5, %v286_v17  ;;  %v36_v30 = vld [vmem:[%s2838_s0 + $0xe0] sm:$0xff]  ;;  %v37_v31 = vld [vmem:[%s2838_s0 + $0xe8] sm:$0xff] }
  0x14   :  { %v795_v32 = vadd.f32 0.25, %v539_v20  ;;  %v796_v33 = vadd.f32 0.25, %v540_v21  ;;  %v797_v34 = vadd.f32 0.25, %v541_v22  ;;  %v543_v35 = vmul.f32 1.5, %v287_v23  ;;  %v38_v36 = vld [vmem:[%s2838_s0 + $0xf0] sm:$0xff]  ;;  %v39_v41 = vld [vmem:[%s2838_s0 + $0xf8] sm:$0xff] }
  0x15   :  { %1048 = vst [vmem:[%s2839_s1 + $0x80] sm:$0xff] %v792_v26  ;;  %1049 = vst [vmem:[%s2839_s1 + $0x88] sm:$0xff] %v793_v27  ;;  %v798_v37 = vadd.f32 0.25, %v542_v29  ;;  %v288_v38 = vmax.f32 %v32_v18, 0.0  ;;  %v289_v39 = vmax.f32 %v33_v19, 0.0  ;;  %v290_v40 = vmax.f32 %v34_v24, 0.0 }
  0x16   :  { %1050 = vst [vmem:[%s2839_s1 + $0x90] sm:$0xff] %v794_v28  ;;  %1051 = vst [vmem:[%s2839_s1 + $0x98] sm:$0xff] %v795_v32  ;;  %v799_v42 = vadd.f32 0.25, %v543_v35  ;;  %v291_v43 = vmax.f32 %v35_v25, 0.0  ;;  %v292_v44 = vmax.f32 %v36_v30, 0.0  ;;  %v293_v45 = vmax.f32 %v37_v31, 0.0 }
  0x17   :  { %1052 = vst [vmem:[%s2839_s1 + $0xa0] sm:$0xff] %v796_v33  ;;  %1053 = vst [vmem:[%s2839_s1 + $0xa8] sm:$0xff] %v797_v34  ;;  %v544_v46 = vmul.f32 1.5, %v288_v38  ;;  %v545_v47 = vmul.f32 1.5, %v289_v39  ;;  %v546_v48 = vmul.f32 1.5, %v290_v40  ;;  %v294_v49 = vmax.f32 %v38_v36, 0.0 }
  0x18   :  { %1054 = vst [vmem:[%s2839_s1 + $0xb0] sm:$0xff] %v798_v37  ;;  %v40_v50 = vld [vmem:[%s2838_s0 + $0x100] sm:$0xff]  ;;  %v41_v51 = vld [vmem:[%s2838_s0 + $0x108] sm:$0xff]  ;;  %1055 = vst [vmem:[%s2839_s1 + $0xb8] sm:$0xff] %v799_v42  ;;  %v547_v52 = vmul.f32 1.5, %v291_v43  ;;  %v548_v53 = vmul.f32 1.5, %v292_v44 }
  0x19   :  { %v549_v54 = vmul.f32 1.5, %v293_v45  ;;  %v295_v55 = vmax.f32 %v39_v41, 0.0  ;;  %v42_v56 = vld [vmem:[%s2838_s0 + $0x110] sm:$0xff]  ;;  %v43_v57 = vld [vmem:[%s2838_s0 + $0x118] sm:$0xff]  ;;  %v800_v58 = vadd.f32 0.25, %v544_v46  ;;  %v801_v59 = vadd.f32 0.25, %v545_v47 }
  0x1a   :  { %v802_v60 = vadd.f32 0.25, %v546_v48  ;;  %v550_v61 = vmul.f32 1.5, %v294_v49  ;;  %v44_v62 = vld [vmem:[%s2838_s0 + $0x120] sm:$0xff]  ;;  %v45_v63 = vld [vmem:[%s2838_s0 + $0x128] sm:$0xff]  ;;  %v803_v0 = vadd.f32 0.25, %v547_v52  ;;  %v804_v1 = vadd.f32 0.25, %v548_v53 }
  0x1b   :  { %v805_v2 = vadd.f32 0.25, %v549_v54  ;;  %v551_v3 = vmul.f32 1.5, %v295_v55  ;;  %v46_v4 = vld [vmem:[%s2838_s0 + $0x130] sm:$0xff]  ;;  %1056 = vst [vmem:[%s2839_s1 + $0xc0] sm:$0xff] %v800_v58  ;;  %1057 = vst [vmem:[%s2839_s1 + $0xc8] sm:$0xff] %v801_v59  ;;  %v296_v6 = vmax.f32 %v40_v50, 0.0 }
  0x1c   :  { %1058 = vst [vmem:[%s2839_s1 + $0xd0] sm:$0xff] %v802_v60  ;;  %v806_v5 = vadd.f32 0.25, %v550_v61  ;;  %v297_v7 = vmax.f32 %v41_v51, 0.0  ;;  %v298_v8 = vmax.f32 %v42_v56, 0.0  ;;  %v47_v9 = vld [vmem:[%s2838_s0 + $0x138] sm:$0xff]  ;;  %1059 = vst [vmem:[%s2839_s1 + $0xd8] sm:$0xff] %v803_v0 }
  0x1d   :  { %1060 = vst [vmem:[%s2839_s1 + $0xe0] sm:$0xff] %v804_v1  ;;  %1061 = vst [vmem:[%s2839_s1 + $0xe8] sm:$0xff] %v805_v2  ;;  %v807_v10 = vadd.f32 0.25, %v551_v3  ;;  %v299_v11 = vmax.f32 %v43_v57, 0.0  ;;  %v300_v12 = vmax.f32 %v44_v62, 0.0  ;;  %v301_v13 = vmax.f32 %v45_v63, 0.0 }
  0x1e   :  { %1062 = vst [vmem:[%s2839_s1 + $0xf0] sm:$0xff] %v806_v5  ;;  %v552_v14 = vmul.f32 1.5, %v296_v6  ;;  %v553_v15 = vmul.f32 1.5, %v297_v7  ;;  %v554_v16 = vmul.f32 1.5, %v298_v8  ;;  %v302_v17 = vmax.f32 %v46_v4, 0.0  ;;  %v48_v18 = vld [vmem:[%s2838_s0 + $0x140] sm:$0xff] }
  0x1f   :  { %v49_v19 = vld [vmem:[%s2838_s0 + $0x148] sm:$0xff]  ;;  %1063 = vst [vmem:[%s2839_s1 + $0xf8] sm:$0xff] %v807_v10  ;;  %v555_v20 = vmul.f32 1.5, %v299_v11  ;;  %v556_v21 = vmul.f32 1.5, %v300_v12  ;;  %v557_v22 = vmul.f32 1.5, %v301_v13  ;;  %v303_v23 = vmax.f32 %v47_v9, 0.0 }
  0x20   :  { %v50_v24 = vld [vmem:[%s2838_s0 + $0x150] sm:$0xff]  ;;  %v51_v25 = vld [vmem:[%s2838_s0 + $0x158] sm:$0xff]  ;;  %v808_v26 = vadd.f32 0.25, %v552_v14  ;;  %v809_v27 = vadd.f32 0.25, %v553_v15  ;;  %v810_v28 = vadd.f32 0.25, %v554_v16  ;;  %v558_v29 = vmul.f32 1.5, %v302_v17 }
  0x21   :  { %v52_v30 = vld [vmem:[%s2838_s0 + $0x160] sm:$0xff]  ;;  %v53_v31 = vld [vmem:[%s2838_s0 + $0x168] sm:$0xff]  ;;  %v811_v32 = vadd.f32 0.25, %v555_v20  ;;  %v812_v33 = vadd.f32 0.25, %v556_v21  ;;  %v813_v34 = vadd.f32 0.25, %v557_v22  ;;  %v559_v35 = vmul.f32 1.5, %v303_v23 }
  0x22   :  { %v54_v36 = vld [vmem:[%s2838_s0 + $0x170] sm:$0xff]  ;;  %1064 = vst [vmem:[%s2839_s1 + $0x100] sm:$0xff] %v808_v26  ;;  %1065 = vst [vmem:[%s2839_s1 + $0x108] sm:$0xff] %v809_v27  ;;  %v814_v37 = vadd.f32 0.25, %v558_v29  ;;  %v304_v38 = vmax.f32 %v48_v18, 0.0  ;;  %v305_v39 = vmax.f32 %v49_v19, 0.0 }
  0x23   :  { %1066 = vst [vmem:[%s2839_s1 + $0x110] sm:$0xff] %v810_v28  ;;  %v306_v40 = vmax.f32 %v50_v24, 0.0  ;;  %v55_v41 = vld [vmem:[%s2838_s0 + $0x178] sm:$0xff]  ;;  %1067 = vst [vmem:[%s2839_s1 + $0x118] sm:$0xff] %v811_v32  ;;  %v815_v42 = vadd.f32 0.25, %v559_v35  ;;  %v307_v43 = vmax.f32 %v51_v25, 0.0 }
  0x24   :  { %1068 = vst [vmem:[%s2839_s1 + $0x120] sm:$0xff] %v812_v33  ;;  %1069 = vst [vmem:[%s2839_s1 + $0x128] sm:$0xff] %v813_v34  ;;  %v308_v44 = vmax.f32 %v52_v30, 0.0  ;;  %v309_v45 = vmax.f32 %v53_v31, 0.0  ;;  %v560_v46 = vmul.f32 1.5, %v304_v38  ;;  %v561_v47 = vmul.f32 1.5, %v305_v39 }
  0x25   :  { %1070 = vst [vmem:[%s2839_s1 + $0x130] sm:$0xff] %v814_v37  ;;  %v562_v48 = vmul.f32 1.5, %v306_v40  ;;  %v310_v49 = vmax.f32 %v54_v36, 0.0  ;;  %v56_v50 = vld [vmem:[%s2838_s0 + $0x180] sm:$0xff]  ;;  %v57_v51 = vld [vmem:[%s2838_s0 + $0x188] sm:$0xff]  ;;  %1071 = vst [vmem:[%s2839_s1 + $0x138] sm:$0xff] %v815_v42 }
  0x26   :  { %v563_v52 = vmul.f32 1.5, %v307_v43  ;;  %v564_v53 = vmul.f32 1.5, %v308_v44  ;;  %v565_v54 = vmul.f32 1.5, %v309_v45  ;;  %v311_v55 = vmax.f32 %v55_v41, 0.0  ;;  %v58_v56 = vld [vmem:[%s2838_s0 + $0x190] sm:$0xff]  ;;  %v59_v57 = vld [vmem:[%s2838_s0 + $0x198] sm:$0xff] }
  0x27   :  { %v816_v58 = vadd.f32 0.25, %v560_v46  ;;  %v817_v59 = vadd.f32 0.25, %v561_v47  ;;  %v818_v60 = vadd.f32 0.25, %v562_v48  ;;  %v566_v61 = vmul.f32 1.5, %v310_v49  ;;  %v60_v62 = vld [vmem:[%s2838_s0 + $0x1a0] sm:$0xff]  ;;  %v61_v63 = vld [vmem:[%s2838_s0 + $0x1a8] sm:$0xff] }
  0x28   :  { %v819_v0 = vadd.f32 0.25, %v563_v52  ;;  %v820_v1 = vadd.f32 0.25, %v564_v53  ;;  %v821_v2 = vadd.f32 0.25, %v565_v54  ;;  %v567_v3 = vmul.f32 1.5, %v311_v55  ;;  %v62_v4 = vld [vmem:[%s2838_s0 + $0x1b0] sm:$0xff]  ;;  %v63_v9 = vld [vmem:[%s2838_s0 + $0x1b8] sm:$0xff] }
  0x29   :  { %1072 = vst [vmem:[%s2839_s1 + $0x140] sm:$0xff] %v816_v58  ;;  %1073 = vst [vmem:[%s2839_s1 + $0x148] sm:$0xff] %v817_v59  ;;  %v822_v5 = vadd.f32 0.25, %v566_v61  ;;  %v312_v6 = vmax.f32 %v56_v50, 0.0  ;;  %v313_v7 = vmax.f32 %v57_v51, 0.0  ;;  %v314_v8 = vmax.f32 %v58_v56, 0.0 }
  0x2a   :  { %1074 = vst [vmem:[%s2839_s1 + $0x150] sm:$0xff] %v818_v60  ;;  %1075 = vst [vmem:[%s2839_s1 + $0x158] sm:$0xff] %v819_v0  ;;  %v823_v10 = vadd.f32 0.25, %v567_v3  ;;  %v315_v11 = vmax.f32 %v59_v57, 0.0  ;;  %v316_v12 = vmax.f32 %v60_v62, 0.0  ;;  %v317_v13 = vmax.f32 %v61_v63, 0.0 }
  0x2b   :  { %1076 = vst [vmem:[%s2839_s1 + $0x160] sm:$0xff] %v820_v1  ;;  %1077 = vst [vmem:[%s2839_s1 + $0x168] sm:$0xff] %v821_v2  ;;  %v568_v14 = vmul.f32 1.5, %v312_v6  ;;  %v569_v15 = vmul.f32 1.5, %v313_v7  ;;  %v570_v16 = vmul.f32 1.5, %v314_v8  ;;  %v318_v17 = vmax.f32 %v62_v4, 0.0 }
  0x2c   :  { %1078 = vst [vmem:[%s2839_s1 + $0x170] sm:$0xff] %v822_v5  ;;  %v64_v18 = vld [vmem:[%s2838_s0 + $0x1c0] sm:$0xff]  ;;  %v65_v19 = vld [vmem:[%s2838_s0 + $0x1c8] sm:$0xff]  ;;  %1079 = vst [vmem:[%s2839_s1 + $0x178] sm:$0xff] %v823_v10  ;;  %v571_v20 = vmul.f32 1.5, %v315_v11  ;;  %v572_v21 = vmul.f32 1.5, %v316_v12 }
  0x2d   :  { %v573_v22 = vmul.f32 1.5, %v317_v13  ;;  %v319_v23 = vmax.f32 %v63_v9, 0.0  ;;  %v66_v24 = vld [vmem:[%s2838_s0 + $0x1d0] sm:$0xff]  ;;  %v67_v25 = vld [vmem:[%s2838_s0 + $0x1d8] sm:$0xff]  ;;  %v824_v26 = vadd.f32 0.25, %v568_v14  ;;  %v825_v27 = vadd.f32 0.25, %v569_v15 }
  0x2e   :  { %v826_v28 = vadd.f32 0.25, %v570_v16  ;;  %v574_v29 = vmul.f32 1.5, %v318_v17  ;;  %v68_v30 = vld [vmem:[%s2838_s0 + $0x1e0] sm:$0xff]  ;;  %v69_v31 = vld [vmem:[%s2838_s0 + $0x1e8] sm:$0xff]  ;;  %v827_v32 = vadd.f32 0.25, %v571_v20  ;;  %v828_v33 = vadd.f32 0.25, %v572_v21 }
  0x2f   :  { %v829_v34 = vadd.f32 0.25, %v573_v22  ;;  %v575_v35 = vmul.f32 1.5, %v319_v23  ;;  %v70_v36 = vld [vmem:[%s2838_s0 + $0x1f0] sm:$0xff]  ;;  %1080 = vst [vmem:[%s2839_s1 + $0x180] sm:$0xff] %v824_v26  ;;  %1081 = vst [vmem:[%s2839_s1 + $0x188] sm:$0xff] %v825_v27  ;;  %v320_v38 = vmax.f32 %v64_v18, 0.0 }
  0x30   :  { %1082 = vst [vmem:[%s2839_s1 + $0x190] sm:$0xff] %v826_v28  ;;  %v830_v37 = vadd.f32 0.25, %v574_v29  ;;  %v321_v39 = vmax.f32 %v65_v19, 0.0  ;;  %v322_v40 = vmax.f32 %v66_v24, 0.0  ;;  %v71_v41 = vld [vmem:[%s2838_s0 + $0x1f8] sm:$0xff]  ;;  %1083 = vst [vmem:[%s2839_s1 + $0x198] sm:$0xff] %v827_v32 }
  0x31   :  { %1084 = vst [vmem:[%s2839_s1 + $0x1a0] sm:$0xff] %v828_v33  ;;  %1085 = vst [vmem:[%s2839_s1 + $0x1a8] sm:$0xff] %v829_v34  ;;  %v831_v42 = vadd.f32 0.25, %v575_v35  ;;  %v323_v43 = vmax.f32 %v67_v25, 0.0  ;;  %v324_v44 = vmax.f32 %v68_v30, 0.0  ;;  %v325_v45 = vmax.f32 %v69_v31, 0.0 }
  0x32   :  { %1086 = vst [vmem:[%s2839_s1 + $0x1b0] sm:$0xff] %v830_v37  ;;  %v576_v46 = vmul.f32 1.5, %v320_v38  ;;  %v577_v47 = vmul.f32 1.5, %v321_v39  ;;  %v578_v48 = vmul.f32 1.5, %v322_v40  ;;  %v326_v49 = vmax.f32 %v70_v36, 0.0  ;;  %v72_v50 = vld [vmem:[%s2838_s0 + $0x200] sm:$0xff] }
  0x33   :  { %v73_v51 = vld [vmem:[%s2838_s0 + $0x208] sm:$0xff]  ;;  %1087 = vst [vmem:[%s2839_s1 + $0x1b8] sm:$0xff] %v831_v42  ;;  %v579_v52 = vmul.f32 1.5, %v323_v43  ;;  %v580_v53 = vmul.f32 1.5, %v324_v44  ;;  %v581_v54 = vmul.f32 1.5, %v325_v45  ;;  %v327_v55 = vmax.f32 %v71_v41, 0.0 }
  0x34   :  { %v74_v56 = vld [vmem:[%s2838_s0 + $0x210] sm:$0xff]  ;;  %v75_v57 = vld [vmem:[%s2838_s0 + $0x218] sm:$0xff]  ;;  %v832_v58 = vadd.f32 0.25, %v576_v46  ;;  %v833_v59 = vadd.f32 0.25, %v577_v47  ;;  %v834_v60 = vadd.f32 0.25, %v578_v48  ;;  %v582_v61 = vmul.f32 1.5, %v326_v49 }
  0x35   :  { %v76_v62 = vld [vmem:[%s2838_s0 + $0x220] sm:$0xff]  ;;  %v77_v63 = vld [vmem:[%s2838_s0 + $0x228] sm:$0xff]  ;;  %v835_v0 = vadd.f32 0.25, %v579_v52  ;;  %v836_v1 = vadd.f32 0.25, %v580_v53  ;;  %v837_v2 = vadd.f32 0.25, %v581_v54  ;;  %v583_v3 = vmul.f32 1.5, %v327_v55 }
  0x36   :  { %v78_v4 = vld [vmem:[%s2838_s0 + $0x230] sm:$0xff]  ;;  %1088 = vst [vmem:[%s2839_s1 + $0x1c0] sm:$0xff] %v832_v58  ;;  %1089 = vst [vmem:[%s2839_s1 + $0x1c8] sm:$0xff] %v833_v59  ;;  %v838_v5 = vadd.f32 0.25, %v582_v61  ;;  %v328_v6 = vmax.f32 %v72_v50, 0.0  ;;  %v329_v7 = vmax.f32 %v73_v51, 0.0 }
  0x37   :  { %1090 = vst [vmem:[%s2839_s1 + $0x1d0] sm:$0xff] %v834_v60  ;;  %v330_v8 = vmax.f32 %v74_v56, 0.0  ;;  %v79_v9 = vld [vmem:[%s2838_s0 + $0x238] sm:$0xff]  ;;  %1091 = vst [vmem:[%s2839_s1 + $0x1d8] sm:$0xff] %v835_v0  ;;  %v839_v10 = vadd.f32 0.25, %v583_v3  ;;  %v331_v11 = vmax.f32 %v75_v57, 0.0 }
  0x38   :  { %1092 = vst [vmem:[%s2839_s1 + $0x1e0] sm:$0xff] %v836_v1  ;;  %1093 = vst [vmem:[%s2839_s1 + $0x1e8] sm:$0xff] %v837_v2  ;;  %v332_v12 = vmax.f32 %v76_v62, 0.0  ;;  %v333_v13 = vmax.f32 %v77_v63, 0.0  ;;  %v584_v14 = vmul.f32 1.5, %v328_v6  ;;  %v585_v15 = vmul.f32 1.5, %v329_v7 }
  0x39   :  { %1094 = vst [vmem:[%s2839_s1 + $0x1f0] sm:$0xff] %v838_v5  ;;  %v586_v16 = vmul.f32 1.5, %v330_v8  ;;  %v334_v17 = vmax.f32 %v78_v4, 0.0  ;;  %v80_v18 = vld [vmem:[%s2838_s0 + $0x240] sm:$0xff]  ;;  %v81_v19 = vld [vmem:[%s2838_s0 + $0x248] sm:$0xff]  ;;  %1095 = vst [vmem:[%s2839_s1 + $0x1f8] sm:$0xff] %v839_v10 }
  0x3a   :  { %v587_v20 = vmul.f32 1.5, %v331_v11  ;;  %v588_v21 = vmul.f32 1.5, %v332_v12  ;;  %v589_v22 = vmul.f32 1.5, %v333_v13  ;;  %v335_v23 = vmax.f32 %v79_v9, 0.0  ;;  %v82_v24 = vld [vmem:[%s2838_s0 + $0x250] sm:$0xff]  ;;  %v83_v25 = vld [vmem:[%s2838_s0 + $0x258] sm:$0xff] }
  0x3b   :  { %v840_v26 = vadd.f32 0.25, %v584_v14  ;;  %v841_v27 = vadd.f32 0.25, %v585_v15  ;;  %v842_v28 = vadd.f32 0.25, %v586_v16  ;;  %v590_v29 = vmul.f32 1.5, %v334_v17  ;;  %v84_v30 = vld [vmem:[%s2838_s0 + $0x260] sm:$0xff]  ;;  %v85_v31 = vld [vmem:[%s2838_s0 + $0x268] sm:$0xff] }
  0x3c   :  { %v843_v32 = vadd.f32 0.25, %v587_v20  ;;  %v844_v33 = vadd.f32 0.25, %v588_v21  ;;  %v845_v34 = vadd.f32 0.25, %v589_v22  ;;  %v591_v35 = vmul.f32 1.5, %v335_v23  ;;  %v86_v36 = vld [vmem:[%s2838_s0 + $0x270] sm:$0xff]  ;;  %v87_v41 = vld [vmem:[%s2838_s0 + $0x278] sm:$0xff] }
  0x3d   :  { %1096 = vst [vmem:[%s2839_s1 + $0x200] sm:$0xff] %v840_v26  ;;  %1097 = vst [vmem:[%s2839_s1 + $0x208] sm:$0xff] %v841_v27  ;;  %v846_v37 = vadd.f32 0.25, %v590_v29  ;;  %v336_v38 = vmax.f32 %v80_v18, 0.0  ;;  %v337_v39 = vmax.f32 %v81_v19, 0.0  ;;  %v338_v40 = vmax.f32 %v82_v24, 0.0 }
  0x3e   :  { %1098 = vst [vmem:[%s2839_s1 + $0x210] sm:$0xff] %v842_v28  ;;  %1099 = vst [vmem:[%s2839_s1 + $0x218] sm:$0xff] %v843_v32  ;;  %v847_v42 = vadd.f32 0.25, %v591_v35  ;;  %v339_v43 = vmax.f32 %v83_v25, 0.0  ;;  %v340_v44 = vmax.f32 %v84_v30, 0.0  ;;  %v341_v45 = vmax.f32 %v85_v31, 0.0 }
  0x3f   :  { %1100 = vst [vmem:[%s2839_s1 + $0x220] sm:$0xff] %v844_v33  ;;  %1101 = vst [vmem:[%s2839_s1 + $0x228] sm:$0xff] %v845_v34  ;;  %v592_v46 = vmul.f32 1.5, %v336_v38  ;;  %v593_v47 = vmul.f32 1.5, %v337_v39  ;;  %v594_v48 = vmul.f32 1.5, %v338_v40  ;;  %v342_v49 = vmax.f32 %v86_v36, 0.0 }
  0x40   :  { %1102 = vst [vmem:[%s2839_s1 + $0x230] sm:$0xff] %v846_v37  ;;  %v88_v50 = vld [vmem:[%s2838_s0 + $0x280] sm:$0xff]  ;;  %v89_v51 = vld [vmem:[%s2838_s0 + $0x288] sm:$0xff]  ;;  %1103 = vst [vmem:[%s2839_s1 + $0x238] sm:$0xff] %v847_v42  ;;  %v595_v52 = vmul.f32 1.5, %v339_v43  ;;  %v596_v53 = vmul.f32 1.5, %v340_v44 }
  0x41   :  { %v597_v54 = vmul.f32 1.5, %v341_v45  ;;  %v343_v55 = vmax.f32 %v87_v41, 0.0  ;;  %v90_v56 = vld [vmem:[%s2838_s0 + $0x290] sm:$0xff]  ;;  %v91_v57 = vld [vmem:[%s2838_s0 + $0x298] sm:$0xff]  ;;  %v848_v58 = vadd.f32 0.25, %v592_v46  ;;  %v849_v59 = vadd.f32 0.25, %v593_v47 }
  0x42   :  { %v850_v60 = vadd.f32 0.25, %v594_v48  ;;  %v598_v61 = vmul.f32 1.5, %v342_v49  ;;  %v92_v62 = vld [vmem:[%s2838_s0 + $0x2a0] sm:$0xff]  ;;  %v93_v63 = vld [vmem:[%s2838_s0 + $0x2a8] sm:$0xff]  ;;  %v851_v0 = vadd.f32 0.25, %v595_v52  ;;  %v852_v1 = vadd.f32 0.25, %v596_v53 }
  0x43   :  { %v853_v2 = vadd.f32 0.25, %v597_v54  ;;  %v599_v3 = vmul.f32 1.5, %v343_v55  ;;  %v94_v4 = vld [vmem:[%s2838_s0 + $0x2b0] sm:$0xff]  ;;  %1104 = vst [vmem:[%s2839_s1 + $0x240] sm:$0xff] %v848_v58  ;;  %1105 = vst [vmem:[%s2839_s1 + $0x248] sm:$0xff] %v849_v59  ;;  %v344_v6 = vmax.f32 %v88_v50, 0.0 }
  0x44   :  { %1106 = vst [vmem:[%s2839_s1 + $0x250] sm:$0xff] %v850_v60  ;;  %v854_v5 = vadd.f32 0.25, %v598_v61  ;;  %v345_v7 = vmax.f32 %v89_v51, 0.0  ;;  %v346_v8 = vmax.f32 %v90_v56, 0.0  ;;  %v95_v9 = vld [vmem:[%s2838_s0 + $0x2b8] sm:$0xff]  ;;  %1107 = vst [vmem:[%s2839_s1 + $0x258] sm:$0xff] %v851_v0 }
  0x45   :  { %1108 = vst [vmem:[%s2839_s1 + $0x260] sm:$0xff] %v852_v1  ;;  %1109 = vst [vmem:[%s2839_s1 + $0x268] sm:$0xff] %v853_v2  ;;  %v855_v10 = vadd.f32 0.25, %v599_v3  ;;  %v347_v11 = vmax.f32 %v91_v57, 0.0  ;;  %v348_v12 = vmax.f32 %v92_v62, 0.0  ;;  %v349_v13 = vmax.f32 %v93_v63, 0.0 }
  0x46   :  { %1110 = vst [vmem:[%s2839_s1 + $0x270] sm:$0xff] %v854_v5  ;;  %v600_v14 = vmul.f32 1.5, %v344_v6  ;;  %v601_v15 = vmul.f32 1.5, %v345_v7  ;;  %v602_v16 = vmul.f32 1.5, %v346_v8  ;;  %v350_v17 = vmax.f32 %v94_v4, 0.0  ;;  %v96_v18 = vld [vmem:[%s2838_s0 + $0x2c0] sm:$0xff] }
  0x47   :  { %v97_v19 = vld [vmem:[%s2838_s0 + $0x2c8] sm:$0xff]  ;;  %1111 = vst [vmem:[%s2839_s1 + $0x278] sm:$0xff] %v855_v10  ;;  %v603_v20 = vmul.f32 1.5, %v347_v11  ;;  %v604_v21 = vmul.f32 1.5, %v348_v12  ;;  %v605_v22 = vmul.f32 1.5, %v349_v13  ;;  %v351_v23 = vmax.f32 %v95_v9, 0.0 }
  0x48   :  { %v98_v24 = vld [vmem:[%s2838_s0 + $0x2d0] sm:$0xff]  ;;  %v99_v25 = vld [vmem:[%s2838_s0 + $0x2d8] sm:$0xff]  ;;  %v856_v26 = vadd.f32 0.25, %v600_v14  ;;  %v857_v27 = vadd.f32 0.25, %v601_v15  ;;  %v858_v28 = vadd.f32 0.25, %v602_v16  ;;  %v606_v29 = vmul.f32 1.5, %v350_v17 }
  0x49   :  { %v100_v30 = vld [vmem:[%s2838_s0 + $0x2e0] sm:$0xff]  ;;  %v101_v31 = vld [vmem:[%s2838_s0 + $0x2e8] sm:$0xff]  ;;  %v859_v32 = vadd.f32 0.25, %v603_v20  ;;  %v860_v33 = vadd.f32 0.25, %v604_v21  ;;  %v861_v34 = vadd.f32 0.25, %v605_v22  ;;  %v607_v35 = vmul.f32 1.5, %v351_v23 }
  0x4a   :  { %v102_v36 = vld [vmem:[%s2838_s0 + $0x2f0] sm:$0xff]  ;;  %1112 = vst [vmem:[%s2839_s1 + $0x280] sm:$0xff] %v856_v26  ;;  %1113 = vst [vmem:[%s2839_s1 + $0x288] sm:$0xff] %v857_v27  ;;  %v862_v37 = vadd.f32 0.25, %v606_v29  ;;  %v352_v38 = vmax.f32 %v96_v18, 0.0  ;;  %v353_v39 = vmax.f32 %v97_v19, 0.0 }
  0x4b   :  { %1114 = vst [vmem:[%s2839_s1 + $0x290] sm:$0xff] %v858_v28  ;;  %v354_v40 = vmax.f32 %v98_v24, 0.0  ;;  %v103_v41 = vld [vmem:[%s2838_s0 + $0x2f8] sm:$0xff]  ;;  %1115 = vst [vmem:[%s2839_s1 + $0x298] sm:$0xff] %v859_v32  ;;  %v863_v42 = vadd.f32 0.25, %v607_v35  ;;  %v355_v43 = vmax.f32 %v99_v25, 0.0 }
  0x4c   :  { %1116 = vst [vmem:[%s2839_s1 + $0x2a0] sm:$0xff] %v860_v33  ;;  %1117 = vst [vmem:[%s2839_s1 + $0x2a8] sm:$0xff] %v861_v34  ;;  %v356_v44 = vmax.f32 %v100_v30, 0.0  ;;  %v357_v45 = vmax.f32 %v101_v31, 0.0  ;;  %v608_v46 = vmul.f32 1.5, %v352_v38  ;;  %v609_v47 = vmul.f32 1.5, %v353_v39 }
  0x4d   :  { %1118 = vst [vmem:[%s2839_s1 + $0x2b0] sm:$0xff] %v862_v37  ;;  %v610_v48 = vmul.f32 1.5, %v354_v40  ;;  %v358_v49 = vmax.f32 %v102_v36, 0.0  ;;  %v104_v50 = vld [vmem:[%s2838_s0 + $0x300] sm:$0xff]  ;;  %v105_v51 = vld [vmem:[%s2838_s0 + $0x308] sm:$0xff]  ;;  %1119 = vst [vmem:[%s2839_s1 + $0x2b8] sm:$0xff] %v863_v42 }
  0x4e   :  { %v611_v52 = vmul.f32 1.5, %v355_v43  ;;  %v612_v53 = vmul.f32 1.5, %v356_v44  ;;  %v613_v54 = vmul.f32 1.5, %v357_v45  ;;  %v359_v55 = vmax.f32 %v103_v41, 0.0  ;;  %v106_v56 = vld [vmem:[%s2838_s0 + $0x310] sm:$0xff]  ;;  %v107_v57 = vld [vmem:[%s2838_s0 + $0x318] sm:$0xff] }
  0x4f   :  { %v864_v58 = vadd.f32 0.25, %v608_v46  ;;  %v865_v59 = vadd.f32 0.25, %v609_v47  ;;  %v866_v60 = vadd.f32 0.25, %v610_v48  ;;  %v614_v61 = vmul.f32 1.5, %v358_v49  ;;  %v108_v62 = vld [vmem:[%s2838_s0 + $0x320] sm:$0xff]  ;;  %v109_v63 = vld [vmem:[%s2838_s0 + $0x328] sm:$0xff] }
  0x50   :  { %v867_v0 = vadd.f32 0.25, %v611_v52  ;;  %v868_v1 = vadd.f32 0.25, %v612_v53  ;;  %v869_v2 = vadd.f32 0.25, %v613_v54  ;;  %v615_v3 = vmul.f32 1.5, %v359_v55  ;;  %v110_v4 = vld [vmem:[%s2838_s0 + $0x330] sm:$0xff]  ;;  %v111_v9 = vld [vmem:[%s2838_s0 + $0x338] sm:$0xff] }
  0x51   :  { %1120 = vst [vmem:[%s2839_s1 + $0x2c0] sm:$0xff] %v864_v58  ;;  %1121 = vst [vmem:[%s2839_s1 + $0x2c8] sm:$0xff] %v865_v59  ;;  %v870_v5 = vadd.f32 0.25, %v614_v61  ;;  %v360_v6 = vmax.f32 %v104_v50, 0.0  ;;  %v361_v7 = vmax.f32 %v105_v51, 0.0  ;;  %v362_v8 = vmax.f32 %v106_v56, 0.0 }
  0x52   :  { %1122 = vst [vmem:[%s2839_s1 + $0x2d0] sm:$0xff] %v866_v60  ;;  %1123 = vst [vmem:[%s2839_s1 + $0x2d8] sm:$0xff] %v867_v0  ;;  %v871_v10 = vadd.f32 0.25, %v615_v3  ;;  %v363_v11 = vmax.f32 %v107_v57, 0.0  ;;  %v364_v12 = vmax.f32 %v108_v62, 0.0  ;;  %v365_v13 = vmax.f32 %v109_v63, 0.0 }
  0x53   :  { %1124 = vst [vmem:[%s2839_s1 + $0x2e0] sm:$0xff] %v868_v1  ;;  %1125 = vst [vmem:[%s2839_s1 + $0x2e8] sm:$0xff] %v869_v2  ;;  %v616_v14 = vmul.f32 1.5, %v360_v6  ;;  %v617_v15 = vmul.f32 1.5, %v361_v7  ;;  %v618_v16 = vmul.f32 1.5, %v362_v8  ;;  %v366_v17 = vmax.f32 %v110_v4, 0.0 }
  0x54   :  { %1126 = vst [vmem:[%s2839_s1 + $0x2f0] sm:$0xff] %v870_v5  ;;  %v112_v18 = vld [vmem:[%s2838_s0 + $0x340] sm:$0xff]  ;;  %v113_v19 = vld [vmem:[%s2838_s0 + $0x348] sm:$0xff]  ;;  %1127 = vst [vmem:[%s2839_s1 + $0x2f8] sm:$0xff] %v871_v10  ;;  %v619_v20 = vmul.f32 1.5, %v363_v11  ;;  %v620_v21 = vmul.f32 1.5, %v364_v12 }
  0x55   :  { %v621_v22 = vmul.f32 1.5, %v365_v13  ;;  %v367_v23 = vmax.f32 %v111_v9, 0.0  ;;  %v114_v24 = vld [vmem:[%s2838_s0 + $0x350] sm:$0xff]  ;;  %v115_v25 = vld [vmem:[%s2838_s0 + $0x358] sm:$0xff]  ;;  %v872_v26 = vadd.f32 0.25, %v616_v14  ;;  %v873_v27 = vadd.f32 0.25, %v617_v15 }
  0x56   :  { %v874_v28 = vadd.f32 0.25, %v618_v16  ;;  %v622_v29 = vmul.f32 1.5, %v366_v17  ;;  %v116_v30 = vld [vmem:[%s2838_s0 + $0x360] sm:$0xff]  ;;  %v117_v31 = vld [vmem:[%s2838_s0 + $0x368] sm:$0xff]  ;;  %v875_v32 = vadd.f32 0.25, %v619_v20  ;;  %v876_v33 = vadd.f32 0.25, %v620_v21 }
  0x57   :  { %v877_v34 = vadd.f32 0.25, %v621_v22  ;;  %v623_v35 = vmul.f32 1.5, %v367_v23  ;;  %v118_v36 = vld [vmem:[%s2838_s0 + $0x370] sm:$0xff]  ;;  %1128 = vst [vmem:[%s2839_s1 + $0x300] sm:$0xff] %v872_v26  ;;  %1129 = vst [vmem:[%s2839_s1 + $0x308] sm:$0xff] %v873_v27  ;;  %v368_v38 = vmax.f32 %v112_v18, 0.0 }
  0x58   :  { %1130 = vst [vmem:[%s2839_s1 + $0x310] sm:$0xff] %v874_v28  ;;  %v878_v37 = vadd.f32 0.25, %v622_v29  ;;  %v369_v39 = vmax.f32 %v113_v19, 0.0  ;;  %v370_v40 = vmax.f32 %v114_v24, 0.0  ;;  %v119_v41 = vld [vmem:[%s2838_s0 + $0x378] sm:$0xff]  ;;  %1131 = vst [vmem:[%s2839_s1 + $0x318] sm:$0xff] %v875_v32 }
  0x59   :  { %1132 = vst [vmem:[%s2839_s1 + $0x320] sm:$0xff] %v876_v33  ;;  %1133 = vst [vmem:[%s2839_s1 + $0x328] sm:$0xff] %v877_v34  ;;  %v879_v42 = vadd.f32 0.25, %v623_v35  ;;  %v371_v43 = vmax.f32 %v115_v25, 0.0  ;;  %v372_v44 = vmax.f32 %v116_v30, 0.0  ;;  %v373_v45 = vmax.f32 %v117_v31, 0.0 }
  0x5a   :  { %1134 = vst [vmem:[%s2839_s1 + $0x330] sm:$0xff] %v878_v37  ;;  %v624_v46 = vmul.f32 1.5, %v368_v38  ;;  %v625_v47 = vmul.f32 1.5, %v369_v39  ;;  %v626_v48 = vmul.f32 1.5, %v370_v40  ;;  %v374_v49 = vmax.f32 %v118_v36, 0.0  ;;  %v120_v50 = vld [vmem:[%s2838_s0 + $0x380] sm:$0xff] }
  0x5b   :  { %v121_v51 = vld [vmem:[%s2838_s0 + $0x388] sm:$0xff]  ;;  %1135 = vst [vmem:[%s2839_s1 + $0x338] sm:$0xff] %v879_v42  ;;  %v627_v52 = vmul.f32 1.5, %v371_v43  ;;  %v628_v53 = vmul.f32 1.5, %v372_v44  ;;  %v629_v54 = vmul.f32 1.5, %v373_v45  ;;  %v375_v55 = vmax.f32 %v119_v41, 0.0 }
  0x5c   :  { %v122_v56 = vld [vmem:[%s2838_s0 + $0x390] sm:$0xff]  ;;  %v123_v57 = vld [vmem:[%s2838_s0 + $0x398] sm:$0xff]  ;;  %v880_v58 = vadd.f32 0.25, %v624_v46  ;;  %v881_v59 = vadd.f32 0.25, %v625_v47  ;;  %v882_v60 = vadd.f32 0.25, %v626_v48  ;;  %v630_v61 = vmul.f32 1.5, %v374_v49 }
  0x5d   :  { %v124_v62 = vld [vmem:[%s2838_s0 + $0x3a0] sm:$0xff]  ;;  %v125_v63 = vld [vmem:[%s2838_s0 + $0x3a8] sm:$0xff]  ;;  %v883_v0 = vadd.f32 0.25, %v627_v52  ;;  %v884_v1 = vadd.f32 0.25, %v628_v53  ;;  %v885_v2 = vadd.f32 0.25, %v629_v54  ;;  %v631_v3 = vmul.f32 1.5, %v375_v55 }
  0x5e   :  { %v126_v4 = vld [vmem:[%s2838_s0 + $0x3b0] sm:$0xff]  ;;  %1136 = vst [vmem:[%s2839_s1 + $0x340] sm:$0xff] %v880_v58  ;;  %1137 = vst [vmem:[%s2839_s1 + $0x348] sm:$0xff] %v881_v59  ;;  %v886_v5 = vadd.f32 0.25, %v630_v61  ;;  %v376_v6 = vmax.f32 %v120_v50, 0.0  ;;  %v377_v7 = vmax.f32 %v121_v51, 0.0 }
  0x5f   :  { %1138 = vst [vmem:[%s2839_s1 + $0x350] sm:$0xff] %v882_v60  ;;  %v378_v8 = vmax.f32 %v122_v56, 0.0  ;;  %v127_v9 = vld [vmem:[%s2838_s0 + $0x3b8] sm:$0xff]  ;;  %1139 = vst [vmem:[%s2839_s1 + $0x358] sm:$0xff] %v883_v0  ;;  %v887_v10 = vadd.f32 0.25, %v631_v3  ;;  %v379_v11 = vmax.f32 %v123_v57, 0.0 }
  0x60   :  { %1140 = vst [vmem:[%s2839_s1 + $0x360] sm:$0xff] %v884_v1  ;;  %1141 = vst [vmem:[%s2839_s1 + $0x368] sm:$0xff] %v885_v2  ;;  %v380_v12 = vmax.f32 %v124_v62, 0.0  ;;  %v381_v13 = vmax.f32 %v125_v63, 0.0  ;;  %v632_v14 = vmul.f32 1.5, %v376_v6  ;;  %v633_v15 = vmul.f32 1.5, %v377_v7 }
  0x61   :  { %1142 = vst [vmem:[%s2839_s1 + $0x370] sm:$0xff] %v886_v5  ;;  %v634_v16 = vmul.f32 1.5, %v378_v8  ;;  %v382_v17 = vmax.f32 %v126_v4, 0.0  ;;  %v128_v18 = vld [vmem:[%s2838_s0 + $0x3c0] sm:$0xff]  ;;  %v129_v19 = vld [vmem:[%s2838_s0 + $0x3c8] sm:$0xff]  ;;  %1143 = vst [vmem:[%s2839_s1 + $0x378] sm:$0xff] %v887_v10 }
  0x62   :  { %v635_v20 = vmul.f32 1.5, %v379_v11  ;;  %v636_v21 = vmul.f32 1.5, %v380_v12  ;;  %v637_v22 = vmul.f32 1.5, %v381_v13  ;;  %v383_v23 = vmax.f32 %v127_v9, 0.0  ;;  %v130_v24 = vld [vmem:[%s2838_s0 + $0x3d0] sm:$0xff]  ;;  %v131_v25 = vld [vmem:[%s2838_s0 + $0x3d8] sm:$0xff] }
  0x63   :  { %v888_v26 = vadd.f32 0.25, %v632_v14  ;;  %v889_v27 = vadd.f32 0.25, %v633_v15  ;;  %v890_v28 = vadd.f32 0.25, %v634_v16  ;;  %v638_v29 = vmul.f32 1.5, %v382_v17  ;;  %v132_v30 = vld [vmem:[%s2838_s0 + $0x3e0] sm:$0xff]  ;;  %v133_v31 = vld [vmem:[%s2838_s0 + $0x3e8] sm:$0xff] }
  0x64   :  { %v891_v32 = vadd.f32 0.25, %v635_v20  ;;  %v892_v33 = vadd.f32 0.25, %v636_v21  ;;  %v893_v34 = vadd.f32 0.25, %v637_v22  ;;  %v639_v35 = vmul.f32 1.5, %v383_v23  ;;  %v134_v36 = vld [vmem:[%s2838_s0 + $0x3f0] sm:$0xff]  ;;  %v135_v41 = vld [vmem:[%s2838_s0 + $0x3f8] sm:$0xff] }
  0x65   :  { %1144 = vst [vmem:[%s2839_s1 + $0x380] sm:$0xff] %v888_v26  ;;  %1145 = vst [vmem:[%s2839_s1 + $0x388] sm:$0xff] %v889_v27  ;;  %v894_v37 = vadd.f32 0.25, %v638_v29  ;;  %v384_v38 = vmax.f32 %v128_v18, 0.0  ;;  %v385_v39 = vmax.f32 %v129_v19, 0.0  ;;  %v386_v40 = vmax.f32 %v130_v24, 0.0 }
  0x66   :  { %1146 = vst [vmem:[%s2839_s1 + $0x390] sm:$0xff] %v890_v28  ;;  %1147 = vst [vmem:[%s2839_s1 + $0x398] sm:$0xff] %v891_v32  ;;  %v895_v42 = vadd.f32 0.25, %v639_v35  ;;  %v387_v43 = vmax.f32 %v131_v25, 0.0  ;;  %v388_v44 = vmax.f32 %v132_v30, 0.0  ;;  %v389_v45 = vmax.f32 %v133_v31, 0.0 }
  0x67   :  { %1148 = vst [vmem:[%s2839_s1 + $0x3a0] sm:$0xff] %v892_v33  ;;  %1149 = vst [vmem:[%s2839_s1 + $0x3a8] sm:$0xff] %v893_v34  ;;  %v640_v46 = vmul.f32 1.5, %v384_v38  ;;  %v641_v47 = vmul.f32 1.5, %v385_v39  ;;  %v642_v48 = vmul.f32 1.5, %v386_v40  ;;  %v390_v49 = vmax.f32 %v134_v36, 0.0 }
  0x68   :  { %1150 = vst [vmem:[%s2839_s1 + $0x3b0] sm:$0xff] %v894_v37  ;;  %v136_v50 = vld [vmem:[%s2838_s0 + $0x400] sm:$0xff]  ;;  %v137_v51 = vld [vmem:[%s2838_s0 + $0x408] sm:$0xff]  ;;  %1151 = vst [vmem:[%s2839_s1 + $0x3b8] sm:$0xff] %v895_v42  ;;  %v643_v52 = vmul.f32 1.5, %v387_v43  ;;  %v644_v53 = vmul.f32 1.5, %v388_v44 }
  0x69   :  { %v645_v54 = vmul.f32 1.5, %v389_v45  ;;  %v391_v55 = vmax.f32 %v135_v41, 0.0  ;;  %v138_v56 = vld [vmem:[%s2838_s0 + $0x410] sm:$0xff]  ;;  %v139_v57 = vld [vmem:[%s2838_s0 + $0x418] sm:$0xff]  ;;  %v896_v58 = vadd.f32 0.25, %v640_v46  ;;  %v897_v59 = vadd.f32 0.25, %v641_v47 }
  0x6a   :  { %v898_v60 = vadd.f32 0.25, %v642_v48  ;;  %v646_v61 = vmul.f32 1.5, %v390_v49  ;;  %v140_v62 = vld [vmem:[%s2838_s0 + $0x420] sm:$0xff]  ;;  %v141_v63 = vld [vmem:[%s2838_s0 + $0x428] sm:$0xff]  ;;  %v899_v0 = vadd.f32 0.25, %v643_v52  ;;  %v900_v1 = vadd.f32 0.25, %v644_v53 }
  0x6b   :  { %v901_v2 = vadd.f32 0.25, %v645_v54  ;;  %v647_v3 = vmul.f32 1.5, %v391_v55  ;;  %v142_v4 = vld [vmem:[%s2838_s0 + $0x430] sm:$0xff]  ;;  %1152 = vst [vmem:[%s2839_s1 + $0x3c0] sm:$0xff] %v896_v58  ;;  %1153 = vst [vmem:[%s2839_s1 + $0x3c8] sm:$0xff] %v897_v59  ;;  %v392_v6 = vmax.f32 %v136_v50, 0.0 }
  0x6c   :  { %1154 = vst [vmem:[%s2839_s1 + $0x3d0] sm:$0xff] %v898_v60  ;;  %v902_v5 = vadd.f32 0.25, %v646_v61  ;;  %v393_v7 = vmax.f32 %v137_v51, 0.0  ;;  %v394_v8 = vmax.f32 %v138_v56, 0.0  ;;  %v143_v9 = vld [vmem:[%s2838_s0 + $0x438] sm:$0xff]  ;;  %1155 = vst [vmem:[%s2839_s1 + $0x3d8] sm:$0xff] %v899_v0 }
  0x6d   :  { %1156 = vst [vmem:[%s2839_s1 + $0x3e0] sm:$0xff] %v900_v1  ;;  %1157 = vst [vmem:[%s2839_s1 + $0x3e8] sm:$0xff] %v901_v2  ;;  %v903_v10 = vadd.f32 0.25, %v647_v3  ;;  %v395_v11 = vmax.f32 %v139_v57, 0.0  ;;  %v396_v12 = vmax.f32 %v140_v62, 0.0  ;;  %v397_v13 = vmax.f32 %v141_v63, 0.0 }
  0x6e   :  { %1158 = vst [vmem:[%s2839_s1 + $0x3f0] sm:$0xff] %v902_v5  ;;  %v648_v14 = vmul.f32 1.5, %v392_v6  ;;  %v649_v15 = vmul.f32 1.5, %v393_v7  ;;  %v650_v16 = vmul.f32 1.5, %v394_v8  ;;  %v398_v17 = vmax.f32 %v142_v4, 0.0  ;;  %v144_v18 = vld [vmem:[%s2838_s0 + $0x440] sm:$0xff] }
  0x6f   :  { %v145_v19 = vld [vmem:[%s2838_s0 + $0x448] sm:$0xff]  ;;  %1159 = vst [vmem:[%s2839_s1 + $0x3f8] sm:$0xff] %v903_v10  ;;  %v651_v20 = vmul.f32 1.5, %v395_v11  ;;  %v652_v21 = vmul.f32 1.5, %v396_v12  ;;  %v653_v22 = vmul.f32 1.5, %v397_v13  ;;  %v399_v23 = vmax.f32 %v143_v9, 0.0 }
  0x70   :  { %v146_v24 = vld [vmem:[%s2838_s0 + $0x450] sm:$0xff]  ;;  %v147_v25 = vld [vmem:[%s2838_s0 + $0x458] sm:$0xff]  ;;  %v904_v26 = vadd.f32 0.25, %v648_v14  ;;  %v905_v27 = vadd.f32 0.25, %v649_v15  ;;  %v906_v28 = vadd.f32 0.25, %v650_v16  ;;  %v654_v29 = vmul.f32 1.5, %v398_v17 }
  0x71   :  { %v148_v30 = vld [vmem:[%s2838_s0 + $0x460] sm:$0xff]  ;;  %v149_v31 = vld [vmem:[%s2838_s0 + $0x468] sm:$0xff]  ;;  %v907_v32 = vadd.f32 0.25, %v651_v20  ;;  %v908_v33 = vadd.f32 0.25, %v652_v21  ;;  %v909_v34 = vadd.f32 0.25, %v653_v22  ;;  %v655_v35 = vmul.f32 1.5, %v399_v23 }
  0x72   :  { %v150_v36 = vld [vmem:[%s2838_s0 + $0x470] sm:$0xff]  ;;  %1160 = vst [vmem:[%s2839_s1 + $0x400] sm:$0xff] %v904_v26  ;;  %1161 = vst [vmem:[%s2839_s1 + $0x408] sm:$0xff] %v905_v27  ;;  %v910_v37 = vadd.f32 0.25, %v654_v29  ;;  %v400_v38 = vmax.f32 %v144_v18, 0.0  ;;  %v401_v39 = vmax.f32 %v145_v19, 0.0 }
  0x73   :  { %1162 = vst [vmem:[%s2839_s1 + $0x410] sm:$0xff] %v906_v28  ;;  %v402_v40 = vmax.f32 %v146_v24, 0.0  ;;  %v151_v41 = vld [vmem:[%s2838_s0 + $0x478] sm:$0xff]  ;;  %1163 = vst [vmem:[%s2839_s1 + $0x418] sm:$0xff] %v907_v32  ;;  %v911_v42 = vadd.f32 0.25, %v655_v35  ;;  %v403_v43 = vmax.f32 %v147_v25, 0.0 }
  0x74   :  { %1164 = vst [vmem:[%s2839_s1 + $0x420] sm:$0xff] %v908_v33  ;;  %1165 = vst [vmem:[%s2839_s1 + $0x428] sm:$0xff] %v909_v34  ;;  %v404_v44 = vmax.f32 %v148_v30, 0.0  ;;  %v405_v45 = vmax.f32 %v149_v31, 0.0  ;;  %v656_v46 = vmul.f32 1.5, %v400_v38  ;;  %v657_v47 = vmul.f32 1.5, %v401_v39 }
  0x75   :  { %1166 = vst [vmem:[%s2839_s1 + $0x430] sm:$0xff] %v910_v37  ;;  %v658_v48 = vmul.f32 1.5, %v402_v40  ;;  %v406_v49 = vmax.f32 %v150_v36, 0.0  ;;  %v152_v50 = vld [vmem:[%s2838_s0 + $0x480] sm:$0xff]  ;;  %v153_v51 = vld [vmem:[%s2838_s0 + $0x488] sm:$0xff]  ;;  %1167 = vst [vmem:[%s2839_s1 + $0x438] sm:$0xff] %v911_v42 }
  0x76   :  { %v659_v52 = vmul.f32 1.5, %v403_v43  ;;  %v660_v53 = vmul.f32 1.5, %v404_v44  ;;  %v661_v54 = vmul.f32 1.5, %v405_v45  ;;  %v407_v55 = vmax.f32 %v151_v41, 0.0  ;;  %v154_v56 = vld [vmem:[%s2838_s0 + $0x490] sm:$0xff]  ;;  %v155_v57 = vld [vmem:[%s2838_s0 + $0x498] sm:$0xff] }
  0x77   :  { %v912_v58 = vadd.f32 0.25, %v656_v46  ;;  %v913_v59 = vadd.f32 0.25, %v657_v47  ;;  %v914_v60 = vadd.f32 0.25, %v658_v48  ;;  %v662_v61 = vmul.f32 1.5, %v406_v49  ;;  %v156_v62 = vld [vmem:[%s2838_s0 + $0x4a0] sm:$0xff]  ;;  %v157_v63 = vld [vmem:[%s2838_s0 + $0x4a8] sm:$0xff] }
  0x78   :  { %v915_v0 = vadd.f32 0.25, %v659_v52  ;;  %v916_v1 = vadd.f32 0.25, %v660_v53  ;;  %v917_v2 = vadd.f32 0.25, %v661_v54  ;;  %v663_v3 = vmul.f32 1.5, %v407_v55  ;;  %v158_v4 = vld [vmem:[%s2838_s0 + $0x4b0] sm:$0xff]  ;;  %v159_v9 = vld [vmem:[%s2838_s0 + $0x4b8] sm:$0xff] }
  0x79   :  { %1168 = vst [vmem:[%s2839_s1 + $0x440] sm:$0xff] %v912_v58  ;;  %1169 = vst [vmem:[%s2839_s1 + $0x448] sm:$0xff] %v913_v59  ;;  %v918_v5 = vadd.f32 0.25, %v662_v61  ;;  %v408_v6 = vmax.f32 %v152_v50, 0.0  ;;  %v409_v7 = vmax.f32 %v153_v51, 0.0  ;;  %v410_v8 = vmax.f32 %v154_v56, 0.0 }
  0x7a   :  { %1170 = vst [vmem:[%s2839_s1 + $0x450] sm:$0xff] %v914_v60  ;;  %1171 = vst [vmem:[%s2839_s1 + $0x458] sm:$0xff] %v915_v0  ;;  %v919_v10 = vadd.f32 0.25, %v663_v3  ;;  %v411_v11 = vmax.f32 %v155_v57, 0.0  ;;  %v412_v12 = vmax.f32 %v156_v62, 0.0  ;;  %v413_v13 = vmax.f32 %v157_v63, 0.0 }
  0x7b   :  { %1172 = vst [vmem:[%s2839_s1 + $0x460] sm:$0xff] %v916_v1  ;;  %1173 = vst [vmem:[%s2839_s1 + $0x468] sm:$0xff] %v917_v2  ;;  %v664_v14 = vmul.f32 1.5, %v408_v6  ;;  %v665_v15 = vmul.f32 1.5, %v409_v7  ;;  %v666_v16 = vmul.f32 1.5, %v410_v8  ;;  %v414_v17 = vmax.f32 %v158_v4, 0.0 }
  0x7c   :  { %1174 = vst [vmem:[%s2839_s1 + $0x470] sm:$0xff] %v918_v5  ;;  %v160_v18 = vld [vmem:[%s2838_s0 + $0x4c0] sm:$0xff]  ;;  %v161_v19 = vld [vmem:[%s2838_s0 + $0x4c8] sm:$0xff]  ;;  %1175 = vst [vmem:[%s2839_s1 + $0x478] sm:$0xff] %v919_v10  ;;  %v667_v20 = vmul.f32 1.5, %v411_v11  ;;  %v668_v21 = vmul.f32 1.5, %v412_v12 }
  0x7d   :  { %v669_v22 = vmul.f32 1.5, %v413_v13  ;;  %v415_v23 = vmax.f32 %v159_v9, 0.0  ;;  %v162_v24 = vld [vmem:[%s2838_s0 + $0x4d0] sm:$0xff]  ;;  %v163_v25 = vld [vmem:[%s2838_s0 + $0x4d8] sm:$0xff]  ;;  %v920_v26 = vadd.f32 0.25, %v664_v14  ;;  %v921_v27 = vadd.f32 0.25, %v665_v15 }
  0x7e   :  { %v922_v28 = vadd.f32 0.25, %v666_v16  ;;  %v670_v29 = vmul.f32 1.5, %v414_v17  ;;  %v164_v30 = vld [vmem:[%s2838_s0 + $0x4e0] sm:$0xff]  ;;  %v165_v31 = vld [vmem:[%s2838_s0 + $0x4e8] sm:$0xff]  ;;  %v923_v32 = vadd.f32 0.25, %v667_v20  ;;  %v924_v33 = vadd.f32 0.25, %v668_v21 }
  0x7f   :  { %v925_v34 = vadd.f32 0.25, %v669_v22  ;;  %v671_v35 = vmul.f32 1.5, %v415_v23  ;;  %v166_v36 = vld [vmem:[%s2838_s0 + $0x4f0] sm:$0xff]  ;;  %1176 = vst [vmem:[%s2839_s1 + $0x480] sm:$0xff] %v920_v26  ;;  %1177 = vst [vmem:[%s2839_s1 + $0x488] sm:$0xff] %v921_v27  ;;  %v416_v38 = vmax.f32 %v160_v18, 0.0 }
  0x80   :  { %1178 = vst [vmem:[%s2839_s1 + $0x490] sm:$0xff] %v922_v28  ;;  %v926_v37 = vadd.f32 0.25, %v670_v29  ;;  %v417_v39 = vmax.f32 %v161_v19, 0.0  ;;  %v418_v40 = vmax.f32 %v162_v24, 0.0  ;;  %v167_v41 = vld [vmem:[%s2838_s0 + $0x4f8] sm:$0xff]  ;;  %1179 = vst [vmem:[%s2839_s1 + $0x498] sm:$0xff] %v923_v32 }
  0x81   :  { %1180 = vst [vmem:[%s2839_s1 + $0x4a0] sm:$0xff] %v924_v33  ;;  %1181 = vst [vmem:[%s2839_s1 + $0x4a8] sm:$0xff] %v925_v34  ;;  %v927_v42 = vadd.f32 0.25, %v671_v35  ;;  %v419_v43 = vmax.f32 %v163_v25, 0.0  ;;  %v420_v44 = vmax.f32 %v164_v30, 0.0  ;;  %v421_v45 = vmax.f32 %v165_v31, 0.0 }
  0x82   :  { %1182 = vst [vmem:[%s2839_s1 + $0x4b0] sm:$0xff] %v926_v37  ;;  %v672_v46 = vmul.f32 1.5, %v416_v38  ;;  %v673_v47 = vmul.f32 1.5, %v417_v39  ;;  %v674_v48 = vmul.f32 1.5, %v418_v40  ;;  %v422_v49 = vmax.f32 %v166_v36, 0.0  ;;  %v168_v50 = vld [vmem:[%s2838_s0 + $0x500] sm:$0xff] }
  0x83   :  { %v169_v51 = vld [vmem:[%s2838_s0 + $0x508] sm:$0xff]  ;;  %1183 = vst [vmem:[%s2839_s1 + $0x4b8] sm:$0xff] %v927_v42  ;;  %v675_v52 = vmul.f32 1.5, %v419_v43  ;;  %v676_v53 = vmul.f32 1.5, %v420_v44  ;;  %v677_v54 = vmul.f32 1.5, %v421_v45  ;;  %v423_v55 = vmax.f32 %v167_v41, 0.0 }
  0x84   :  { %v170_v56 = vld [vmem:[%s2838_s0 + $0x510] sm:$0xff]  ;;  %v171_v57 = vld [vmem:[%s2838_s0 + $0x518] sm:$0xff]  ;;  %v928_v58 = vadd.f32 0.25, %v672_v46  ;;  %v929_v59 = vadd.f32 0.25, %v673_v47  ;;  %v930_v60 = vadd.f32 0.25, %v674_v48  ;;  %v678_v61 = vmul.f32 1.5, %v422_v49 }
  0x85   :  { %v172_v62 = vld [vmem:[%s2838_s0 + $0x520] sm:$0xff]  ;;  %v173_v63 = vld [vmem:[%s2838_s0 + $0x528] sm:$0xff]  ;;  %v931_v0 = vadd.f32 0.25, %v675_v52  ;;  %v932_v1 = vadd.f32 0.25, %v676_v53  ;;  %v933_v2 = vadd.f32 0.25, %v677_v54  ;;  %v679_v3 = vmul.f32 1.5, %v423_v55 }
  0x86   :  { %v174_v4 = vld [vmem:[%s2838_s0 + $0x530] sm:$0xff]  ;;  %1184 = vst [vmem:[%s2839_s1 + $0x4c0] sm:$0xff] %v928_v58  ;;  %1185 = vst [vmem:[%s2839_s1 + $0x4c8] sm:$0xff] %v929_v59  ;;  %v934_v5 = vadd.f32 0.25, %v678_v61  ;;  %v424_v6 = vmax.f32 %v168_v50, 0.0  ;;  %v425_v7 = vmax.f32 %v169_v51, 0.0 }
  0x87   :  { %1186 = vst [vmem:[%s2839_s1 + $0x4d0] sm:$0xff] %v930_v60  ;;  %v426_v8 = vmax.f32 %v170_v56, 0.0  ;;  %v175_v9 = vld [vmem:[%s2838_s0 + $0x538] sm:$0xff]  ;;  %1187 = vst [vmem:[%s2839_s1 + $0x4d8] sm:$0xff] %v931_v0  ;;  %v935_v10 = vadd.f32 0.25, %v679_v3  ;;  %v427_v11 = vmax.f32 %v171_v57, 0.0 }
  0x88   :  { %1188 = vst [vmem:[%s2839_s1 + $0x4e0] sm:$0xff] %v932_v1  ;;  %1189 = vst [vmem:[%s2839_s1 + $0x4e8] sm:$0xff] %v933_v2  ;;  %v428_v12 = vmax.f32 %v172_v62, 0.0  ;;  %v429_v13 = vmax.f32 %v173_v63, 0.0  ;;  %v680_v14 = vmul.f32 1.5, %v424_v6  ;;  %v681_v15 = vmul.f32 1.5, %v425_v7 }
  0x89   :  { %1190 = vst [vmem:[%s2839_s1 + $0x4f0] sm:$0xff] %v934_v5  ;;  %v682_v16 = vmul.f32 1.5, %v426_v8  ;;  %v430_v17 = vmax.f32 %v174_v4, 0.0  ;;  %v176_v18 = vld [vmem:[%s2838_s0 + $0x540] sm:$0xff]  ;;  %v177_v19 = vld [vmem:[%s2838_s0 + $0x548] sm:$0xff]  ;;  %1191 = vst [vmem:[%s2839_s1 + $0x4f8] sm:$0xff] %v935_v10 }
  0x8a   :  { %v683_v20 = vmul.f32 1.5, %v427_v11  ;;  %v684_v21 = vmul.f32 1.5, %v428_v12  ;;  %v685_v22 = vmul.f32 1.5, %v429_v13  ;;  %v431_v23 = vmax.f32 %v175_v9, 0.0  ;;  %v178_v24 = vld [vmem:[%s2838_s0 + $0x550] sm:$0xff]  ;;  %v179_v25 = vld [vmem:[%s2838_s0 + $0x558] sm:$0xff] }
  0x8b   :  { %v936_v26 = vadd.f32 0.25, %v680_v14  ;;  %v937_v27 = vadd.f32 0.25, %v681_v15  ;;  %v938_v28 = vadd.f32 0.25, %v682_v16  ;;  %v686_v29 = vmul.f32 1.5, %v430_v17  ;;  %v180_v30 = vld [vmem:[%s2838_s0 + $0x560] sm:$0xff]  ;;  %v181_v31 = vld [vmem:[%s2838_s0 + $0x568] sm:$0xff] }
  0x8c   :  { %v939_v32 = vadd.f32 0.25, %v683_v20  ;;  %v940_v33 = vadd.f32 0.25, %v684_v21  ;;  %v941_v34 = vadd.f32 0.25, %v685_v22  ;;  %v687_v35 = vmul.f32 1.5, %v431_v23  ;;  %v182_v36 = vld [vmem:[%s2838_s0 + $0x570] sm:$0xff]  ;;  %v183_v41 = vld [vmem:[%s2838_s0 + $0x578] sm:$0xff] }
  0x8d   :  { %1192 = vst [vmem:[%s2839_s1 + $0x500] sm:$0xff] %v936_v26  ;;  %1193 = vst [vmem:[%s2839_s1 + $0x508] sm:$0xff] %v937_v27  ;;  %v942_v37 = vadd.f32 0.25, %v686_v29  ;;  %v432_v38 = vmax.f32 %v176_v18, 0.0  ;;  %v433_v39 = vmax.f32 %v177_v19, 0.0  ;;  %v434_v40 = vmax.f32 %v178_v24, 0.0 }
  0x8e   :  { %1194 = vst [vmem:[%s2839_s1 + $0x510] sm:$0xff] %v938_v28  ;;  %1195 = vst [vmem:[%s2839_s1 + $0x518] sm:$0xff] %v939_v32  ;;  %v943_v42 = vadd.f32 0.25, %v687_v35  ;;  %v435_v43 = vmax.f32 %v179_v25, 0.0  ;;  %v436_v44 = vmax.f32 %v180_v30, 0.0  ;;  %v437_v45 = vmax.f32 %v181_v31, 0.0 }
  0x8f   :  { %1196 = vst [vmem:[%s2839_s1 + $0x520] sm:$0xff] %v940_v33  ;;  %1197 = vst [vmem:[%s2839_s1 + $0x528] sm:$0xff] %v941_v34  ;;  %v688_v46 = vmul.f32 1.5, %v432_v38  ;;  %v689_v47 = vmul.f32 1.5, %v433_v39  ;;  %v690_v48 = vmul.f32 1.5, %v434_v40  ;;  %v438_v49 = vmax.f32 %v182_v36, 0.0 }
  0x90   :  { %1198 = vst [vmem:[%s2839_s1 + $0x530] sm:$0xff] %v942_v37  ;;  %v184_v50 = vld [vmem:[%s2838_s0 + $0x580] sm:$0xff]  ;;  %v185_v51 = vld [vmem:[%s2838_s0 + $0x588] sm:$0xff]  ;;  %1199 = vst [vmem:[%s2839_s1 + $0x538] sm:$0xff] %v943_v42  ;;  %v691_v52 = vmul.f32 1.5, %v435_v43  ;;  %v692_v53 = vmul.f32 1.5, %v436_v44 }
  0x91   :  { %v693_v54 = vmul.f32 1.5, %v437_v45  ;;  %v439_v55 = vmax.f32 %v183_v41, 0.0  ;;  %v186_v56 = vld [vmem:[%s2838_s0 + $0x590] sm:$0xff]  ;;  %v187_v57 = vld [vmem:[%s2838_s0 + $0x598] sm:$0xff]  ;;  %v944_v58 = vadd.f32 0.25, %v688_v46  ;;  %v945_v59 = vadd.f32 0.25, %v689_v47 }
  0x92   :  { %v946_v60 = vadd.f32 0.25, %v690_v48  ;;  %v694_v61 = vmul.f32 1.5, %v438_v49  ;;  %v188_v62 = vld [vmem:[%s2838_s0 + $0x5a0] sm:$0xff]  ;;  %v189_v63 = vld [vmem:[%s2838_s0 + $0x5a8] sm:$0xff]  ;;  %v947_v0 = vadd.f32 0.25, %v691_v52  ;;  %v948_v1 = vadd.f32 0.25, %v692_v53 }
  0x93   :  { %v949_v2 = vadd.f32 0.25, %v693_v54  ;;  %v695_v3 = vmul.f32 1.5, %v439_v55  ;;  %v190_v4 = vld [vmem:[%s2838_s0 + $0x5b0] sm:$0xff]  ;;  %1200 = vst [vmem:[%s2839_s1 + $0x540] sm:$0xff] %v944_v58  ;;  %1201 = vst [vmem:[%s2839_s1 + $0x548] sm:$0xff] %v945_v59  ;;  %v440_v6 = vmax.f32 %v184_v50, 0.0 }
  0x94   :  { %1202 = vst [vmem:[%s2839_s1 + $0x550] sm:$0xff] %v946_v60  ;;  %v950_v5 = vadd.f32 0.25, %v694_v61  ;;  %v441_v7 = vmax.f32 %v185_v51, 0.0  ;;  %v442_v8 = vmax.f32 %v186_v56, 0.0  ;;  %v191_v9 = vld [vmem:[%s2838_s0 + $0x5b8] sm:$0xff]  ;;  %1203 = vst [vmem:[%s2839_s1 + $0x558] sm:$0xff] %v947_v0 }
  0x95   :  { %1204 = vst [vmem:[%s2839_s1 + $0x560] sm:$0xff] %v948_v1  ;;  %1205 = vst [vmem:[%s2839_s1 + $0x568] sm:$0xff] %v949_v2  ;;  %v951_v10 = vadd.f32 0.25, %v695_v3  ;;  %v443_v11 = vmax.f32 %v187_v57, 0.0  ;;  %v444_v12 = vmax.f32 %v188_v62, 0.0  ;;  %v445_v13 = vmax.f32 %v189_v63, 0.0 }
  0x96   :  { %1206 = vst [vmem:[%s2839_s1 + $0x570] sm:$0xff] %v950_v5  ;;  %v696_v14 = vmul.f32 1.5, %v440_v6  ;;  %v697_v15 = vmul.f32 1.5, %v441_v7  ;;  %v698_v16 = vmul.f32 1.5, %v442_v8  ;;  %v446_v17 = vmax.f32 %v190_v4, 0.0  ;;  %v192_v18 = vld [vmem:[%s2838_s0 + $0x5c0] sm:$0xff] }
  0x97   :  { %v193_v19 = vld [vmem:[%s2838_s0 + $0x5c8] sm:$0xff]  ;;  %1207 = vst [vmem:[%s2839_s1 + $0x578] sm:$0xff] %v951_v10  ;;  %v699_v20 = vmul.f32 1.5, %v443_v11  ;;  %v700_v21 = vmul.f32 1.5, %v444_v12  ;;  %v701_v22 = vmul.f32 1.5, %v445_v13  ;;  %v447_v23 = vmax.f32 %v191_v9, 0.0 }
  0x98   :  { %v194_v24 = vld [vmem:[%s2838_s0 + $0x5d0] sm:$0xff]  ;;  %v195_v25 = vld [vmem:[%s2838_s0 + $0x5d8] sm:$0xff]  ;;  %v952_v26 = vadd.f32 0.25, %v696_v14  ;;  %v953_v27 = vadd.f32 0.25, %v697_v15  ;;  %v954_v28 = vadd.f32 0.25, %v698_v16  ;;  %v702_v29 = vmul.f32 1.5, %v446_v17 }
  0x99   :  { %v196_v30 = vld [vmem:[%s2838_s0 + $0x5e0] sm:$0xff]  ;;  %v197_v31 = vld [vmem:[%s2838_s0 + $0x5e8] sm:$0xff]  ;;  %v955_v32 = vadd.f32 0.25, %v699_v20  ;;  %v956_v33 = vadd.f32 0.25, %v700_v21  ;;  %v957_v34 = vadd.f32 0.25, %v701_v22  ;;  %v703_v35 = vmul.f32 1.5, %v447_v23 }
  0x9a   :  { %v198_v36 = vld [vmem:[%s2838_s0 + $0x5f0] sm:$0xff]  ;;  %1208 = vst [vmem:[%s2839_s1 + $0x580] sm:$0xff] %v952_v26  ;;  %1209 = vst [vmem:[%s2839_s1 + $0x588] sm:$0xff] %v953_v27  ;;  %v958_v37 = vadd.f32 0.25, %v702_v29  ;;  %v448_v38 = vmax.f32 %v192_v18, 0.0  ;;  %v449_v39 = vmax.f32 %v193_v19, 0.0 }
  0x9b   :  { %1210 = vst [vmem:[%s2839_s1 + $0x590] sm:$0xff] %v954_v28  ;;  %v450_v40 = vmax.f32 %v194_v24, 0.0  ;;  %v199_v41 = vld [vmem:[%s2838_s0 + $0x5f8] sm:$0xff]  ;;  %1211 = vst [vmem:[%s2839_s1 + $0x598] sm:$0xff] %v955_v32  ;;  %v959_v42 = vadd.f32 0.25, %v703_v35  ;;  %v451_v43 = vmax.f32 %v195_v25, 0.0 }
  0x9c   :  { %1212 = vst [vmem:[%s2839_s1 + $0x5a0] sm:$0xff] %v956_v33  ;;  %1213 = vst [vmem:[%s2839_s1 + $0x5a8] sm:$0xff] %v957_v34  ;;  %v452_v44 = vmax.f32 %v196_v30, 0.0  ;;  %v453_v45 = vmax.f32 %v197_v31, 0.0  ;;  %v704_v46 = vmul.f32 1.5, %v448_v38  ;;  %v705_v47 = vmul.f32 1.5, %v449_v39 }
  0x9d   :  { %1214 = vst [vmem:[%s2839_s1 + $0x5b0] sm:$0xff] %v958_v37  ;;  %v706_v48 = vmul.f32 1.5, %v450_v40  ;;  %v454_v49 = vmax.f32 %v198_v36, 0.0  ;;  %v200_v50 = vld [vmem:[%s2838_s0 + $0x600] sm:$0xff]  ;;  %v201_v51 = vld [vmem:[%s2838_s0 + $0x608] sm:$0xff]  ;;  %1215 = vst [vmem:[%s2839_s1 + $0x5b8] sm:$0xff] %v959_v42 }
  0x9e   :  { %v707_v52 = vmul.f32 1.5, %v451_v43  ;;  %v708_v53 = vmul.f32 1.5, %v452_v44  ;;  %v709_v54 = vmul.f32 1.5, %v453_v45  ;;  %v455_v55 = vmax.f32 %v199_v41, 0.0  ;;  %v202_v56 = vld [vmem:[%s2838_s0 + $0x610] sm:$0xff]  ;;  %v203_v57 = vld [vmem:[%s2838_s0 + $0x618] sm:$0xff] }
  0x9f   :  { %v960_v58 = vadd.f32 0.25, %v704_v46  ;;  %v961_v59 = vadd.f32 0.25, %v705_v47  ;;  %v962_v60 = vadd.f32 0.25, %v706_v48  ;;  %v710_v61 = vmul.f32 1.5, %v454_v49  ;;  %v204_v62 = vld [vmem:[%s2838_s0 + $0x620] sm:$0xff]  ;;  %v205_v63 = vld [vmem:[%s2838_s0 + $0x628] sm:$0xff] }
  0xa0   :  { %v963_v0 = vadd.f32 0.25, %v707_v52  ;;  %v964_v1 = vadd.f32 0.25, %v708_v53  ;;  %v965_v2 = vadd.f32 0.25, %v709_v54  ;;  %v711_v3 = vmul.f32 1.5, %v455_v55  ;;  %v206_v4 = vld [vmem:[%s2838_s0 + $0x630] sm:$0xff]  ;;  %v207_v9 = vld [vmem:[%s2838_s0 + $0x638] sm:$0xff] }
  0xa1   :  { %1216 = vst [vmem:[%s2839_s1 + $0x5c0] sm:$0xff] %v960_v58  ;;  %1217 = vst [vmem:[%s2839_s1 + $0x5c8] sm:$0xff] %v961_v59  ;;  %v966_v5 = vadd.f32 0.25, %v710_v61  ;;  %v456_v6 = vmax.f32 %v200_v50, 0.0  ;;  %v457_v7 = vmax.f32 %v201_v51, 0.0  ;;  %v458_v8 = vmax.f32 %v202_v56, 0.0 }
  0xa2   :  { %1218 = vst [vmem:[%s2839_s1 + $0x5d0] sm:$0xff] %v962_v60  ;;  %1219 = vst [vmem:[%s2839_s1 + $0x5d8] sm:$0xff] %v963_v0  ;;  %v967_v10 = vadd.f32 0.25, %v711_v3  ;;  %v459_v11 = vmax.f32 %v203_v57, 0.0  ;;  %v460_v12 = vmax.f32 %v204_v62, 0.0  ;;  %v461_v13 = vmax.f32 %v205_v63, 0.0 }
  0xa3   :  { %1220 = vst [vmem:[%s2839_s1 + $0x5e0] sm:$0xff] %v964_v1  ;;  %1221 = vst [vmem:[%s2839_s1 + $0x5e8] sm:$0xff] %v965_v2  ;;  %v712_v14 = vmul.f32 1.5, %v456_v6  ;;  %v713_v15 = vmul.f32 1.5, %v457_v7  ;;  %v714_v16 = vmul.f32 1.5, %v458_v8  ;;  %v462_v17 = vmax.f32 %v206_v4, 0.0 }
  0xa4   :  { %1222 = vst [vmem:[%s2839_s1 + $0x5f0] sm:$0xff] %v966_v5  ;;  %v208_v18 = vld [vmem:[%s2838_s0 + $0x640] sm:$0xff]  ;;  %v209_v19 = vld [vmem:[%s2838_s0 + $0x648] sm:$0xff]  ;;  %1223 = vst [vmem:[%s2839_s1 + $0x5f8] sm:$0xff] %v967_v10  ;;  %v715_v20 = vmul.f32 1.5, %v459_v11  ;;  %v716_v21 = vmul.f32 1.5, %v460_v12 }
  0xa5   :  { %v717_v22 = vmul.f32 1.5, %v461_v13  ;;  %v463_v23 = vmax.f32 %v207_v9, 0.0  ;;  %v210_v24 = vld [vmem:[%s2838_s0 + $0x650] sm:$0xff]  ;;  %v211_v25 = vld [vmem:[%s2838_s0 + $0x658] sm:$0xff]  ;;  %v968_v26 = vadd.f32 0.25, %v712_v14  ;;  %v969_v27 = vadd.f32 0.25, %v713_v15 }
  0xa6   :  { %v970_v28 = vadd.f32 0.25, %v714_v16  ;;  %v718_v29 = vmul.f32 1.5, %v462_v17  ;;  %v212_v30 = vld [vmem:[%s2838_s0 + $0x660] sm:$0xff]  ;;  %v213_v31 = vld [vmem:[%s2838_s0 + $0x668] sm:$0xff]  ;;  %v971_v32 = vadd.f32 0.25, %v715_v20  ;;  %v972_v33 = vadd.f32 0.25, %v716_v21 }
  0xa7   :  { %v973_v34 = vadd.f32 0.25, %v717_v22  ;;  %v719_v35 = vmul.f32 1.5, %v463_v23  ;;  %v214_v36 = vld [vmem:[%s2838_s0 + $0x670] sm:$0xff]  ;;  %1224 = vst [vmem:[%s2839_s1 + $0x600] sm:$0xff] %v968_v26  ;;  %1225 = vst [vmem:[%s2839_s1 + $0x608] sm:$0xff] %v969_v27  ;;  %v464_v38 = vmax.f32 %v208_v18, 0.0 }
  0xa8   :  { %1226 = vst [vmem:[%s2839_s1 + $0x610] sm:$0xff] %v970_v28  ;;  %v974_v37 = vadd.f32 0.25, %v718_v29  ;;  %v465_v39 = vmax.f32 %v209_v19, 0.0  ;;  %v466_v40 = vmax.f32 %v210_v24, 0.0  ;;  %v215_v41 = vld [vmem:[%s2838_s0 + $0x678] sm:$0xff]  ;;  %1227 = vst [vmem:[%s2839_s1 + $0x618] sm:$0xff] %v971_v32 }
  0xa9   :  { %1228 = vst [vmem:[%s2839_s1 + $0x620] sm:$0xff] %v972_v33  ;;  %1229 = vst [vmem:[%s2839_s1 + $0x628] sm:$0xff] %v973_v34  ;;  %v975_v42 = vadd.f32 0.25, %v719_v35  ;;  %v467_v43 = vmax.f32 %v211_v25, 0.0  ;;  %v468_v44 = vmax.f32 %v212_v30, 0.0  ;;  %v469_v45 = vmax.f32 %v213_v31, 0.0 }
  0xaa   :  { %1230 = vst [vmem:[%s2839_s1 + $0x630] sm:$0xff] %v974_v37  ;;  %v720_v46 = vmul.f32 1.5, %v464_v38  ;;  %v721_v47 = vmul.f32 1.5, %v465_v39  ;;  %v722_v48 = vmul.f32 1.5, %v466_v40  ;;  %v470_v49 = vmax.f32 %v214_v36, 0.0  ;;  %v216_v50 = vld [vmem:[%s2838_s0 + $0x680] sm:$0xff] }
  0xab   :  { %v217_v51 = vld [vmem:[%s2838_s0 + $0x688] sm:$0xff]  ;;  %1231 = vst [vmem:[%s2839_s1 + $0x638] sm:$0xff] %v975_v42  ;;  %v723_v52 = vmul.f32 1.5, %v467_v43  ;;  %v724_v53 = vmul.f32 1.5, %v468_v44  ;;  %v725_v54 = vmul.f32 1.5, %v469_v45  ;;  %v471_v55 = vmax.f32 %v215_v41, 0.0 }
  0xac   :  { %v218_v56 = vld [vmem:[%s2838_s0 + $0x690] sm:$0xff]  ;;  %v219_v57 = vld [vmem:[%s2838_s0 + $0x698] sm:$0xff]  ;;  %v976_v58 = vadd.f32 0.25, %v720_v46  ;;  %v977_v59 = vadd.f32 0.25, %v721_v47  ;;  %v978_v60 = vadd.f32 0.25, %v722_v48  ;;  %v726_v61 = vmul.f32 1.5, %v470_v49 }
  0xad   :  { %v220_v62 = vld [vmem:[%s2838_s0 + $0x6a0] sm:$0xff]  ;;  %v221_v63 = vld [vmem:[%s2838_s0 + $0x6a8] sm:$0xff]  ;;  %v979_v0 = vadd.f32 0.25, %v723_v52  ;;  %v980_v1 = vadd.f32 0.25, %v724_v53  ;;  %v981_v2 = vadd.f32 0.25, %v725_v54  ;;  %v727_v3 = vmul.f32 1.5, %v471_v55 }
  0xae   :  { %v222_v4 = vld [vmem:[%s2838_s0 + $0x6b0] sm:$0xff]  ;;  %1232 = vst [vmem:[%s2839_s1 + $0x640] sm:$0xff] %v976_v58  ;;  %1233 = vst [vmem:[%s2839_s1 + $0x648] sm:$0xff] %v977_v59  ;;  %v982_v5 = vadd.f32 0.25, %v726_v61  ;;  %v472_v6 = vmax.f32 %v216_v50, 0.0  ;;  %v473_v7 = vmax.f32 %v217_v51, 0.0 }
  0xaf   :  { %1234 = vst [vmem:[%s2839_s1 + $0x650] sm:$0xff] %v978_v60  ;;  %v474_v8 = vmax.f32 %v218_v56, 0.0  ;;  %v223_v9 = vld [vmem:[%s2838_s0 + $0x6b8] sm:$0xff]  ;;  %1235 = vst [vmem:[%s2839_s1 + $0x658] sm:$0xff] %v979_v0  ;;  %v983_v10 = vadd.f32 0.25, %v727_v3  ;;  %v475_v11 = vmax.f32 %v219_v57, 0.0 }
  0xb0   :  { %1236 = vst [vmem:[%s2839_s1 + $0x660] sm:$0xff] %v980_v1  ;;  %1237 = vst [vmem:[%s2839_s1 + $0x668] sm:$0xff] %v981_v2  ;;  %v476_v12 = vmax.f32 %v220_v62, 0.0  ;;  %v477_v13 = vmax.f32 %v221_v63, 0.0  ;;  %v728_v14 = vmul.f32 1.5, %v472_v6  ;;  %v729_v15 = vmul.f32 1.5, %v473_v7 }
  0xb1   :  { %1238 = vst [vmem:[%s2839_s1 + $0x670] sm:$0xff] %v982_v5  ;;  %v730_v16 = vmul.f32 1.5, %v474_v8  ;;  %v478_v17 = vmax.f32 %v222_v4, 0.0  ;;  %v224_v18 = vld [vmem:[%s2838_s0 + $0x6c0] sm:$0xff]  ;;  %v225_v19 = vld [vmem:[%s2838_s0 + $0x6c8] sm:$0xff]  ;;  %1239 = vst [vmem:[%s2839_s1 + $0x678] sm:$0xff] %v983_v10 }
  0xb2   :  { %v731_v20 = vmul.f32 1.5, %v475_v11  ;;  %v732_v21 = vmul.f32 1.5, %v476_v12  ;;  %v733_v22 = vmul.f32 1.5, %v477_v13  ;;  %v479_v23 = vmax.f32 %v223_v9, 0.0  ;;  %v226_v24 = vld [vmem:[%s2838_s0 + $0x6d0] sm:$0xff]  ;;  %v227_v25 = vld [vmem:[%s2838_s0 + $0x6d8] sm:$0xff] }
  0xb3   :  { %v984_v26 = vadd.f32 0.25, %v728_v14  ;;  %v985_v27 = vadd.f32 0.25, %v729_v15  ;;  %v986_v28 = vadd.f32 0.25, %v730_v16  ;;  %v734_v29 = vmul.f32 1.5, %v478_v17  ;;  %v228_v30 = vld [vmem:[%s2838_s0 + $0x6e0] sm:$0xff]  ;;  %v229_v31 = vld [vmem:[%s2838_s0 + $0x6e8] sm:$0xff] }
  0xb4   :  { %v987_v32 = vadd.f32 0.25, %v731_v20  ;;  %v988_v33 = vadd.f32 0.25, %v732_v21  ;;  %v989_v34 = vadd.f32 0.25, %v733_v22  ;;  %v735_v35 = vmul.f32 1.5, %v479_v23  ;;  %v230_v36 = vld [vmem:[%s2838_s0 + $0x6f0] sm:$0xff]  ;;  %v231_v41 = vld [vmem:[%s2838_s0 + $0x6f8] sm:$0xff] }
  0xb5   :  { %1240 = vst [vmem:[%s2839_s1 + $0x680] sm:$0xff] %v984_v26  ;;  %1241 = vst [vmem:[%s2839_s1 + $0x688] sm:$0xff] %v985_v27  ;;  %v990_v37 = vadd.f32 0.25, %v734_v29  ;;  %v480_v38 = vmax.f32 %v224_v18, 0.0  ;;  %v481_v39 = vmax.f32 %v225_v19, 0.0  ;;  %v482_v40 = vmax.f32 %v226_v24, 0.0 }
  0xb6   :  { %1242 = vst [vmem:[%s2839_s1 + $0x690] sm:$0xff] %v986_v28  ;;  %1243 = vst [vmem:[%s2839_s1 + $0x698] sm:$0xff] %v987_v32  ;;  %v991_v42 = vadd.f32 0.25, %v735_v35  ;;  %v483_v43 = vmax.f32 %v227_v25, 0.0  ;;  %v484_v44 = vmax.f32 %v228_v30, 0.0  ;;  %v485_v45 = vmax.f32 %v229_v31, 0.0 }
  0xb7   :  { %1244 = vst [vmem:[%s2839_s1 + $0x6a0] sm:$0xff] %v988_v33  ;;  %1245 = vst [vmem:[%s2839_s1 + $0x6a8] sm:$0xff] %v989_v34  ;;  %v736_v46 = vmul.f32 1.5, %v480_v38  ;;  %v737_v47 = vmul.f32 1.5, %v481_v39  ;;  %v738_v48 = vmul.f32 1.5, %v482_v40  ;;  %v486_v49 = vmax.f32 %v230_v36, 0.0 }
  0xb8   :  { %1246 = vst [vmem:[%s2839_s1 + $0x6b0] sm:$0xff] %v990_v37  ;;  %v232_v50 = vld [vmem:[%s2838_s0 + $0x700] sm:$0xff]  ;;  %v233_v51 = vld [vmem:[%s2838_s0 + $0x708] sm:$0xff]  ;;  %1247 = vst [vmem:[%s2839_s1 + $0x6b8] sm:$0xff] %v991_v42  ;;  %v739_v52 = vmul.f32 1.5, %v483_v43  ;;  %v740_v53 = vmul.f32 1.5, %v484_v44 }
  0xb9   :  { %v741_v54 = vmul.f32 1.5, %v485_v45  ;;  %v487_v55 = vmax.f32 %v231_v41, 0.0  ;;  %v234_v56 = vld [vmem:[%s2838_s0 + $0x710] sm:$0xff]  ;;  %v235_v57 = vld [vmem:[%s2838_s0 + $0x718] sm:$0xff]  ;;  %v992_v58 = vadd.f32 0.25, %v736_v46  ;;  %v993_v59 = vadd.f32 0.25, %v737_v47 }
  0xba   :  { %v994_v60 = vadd.f32 0.25, %v738_v48  ;;  %v742_v61 = vmul.f32 1.5, %v486_v49  ;;  %v236_v62 = vld [vmem:[%s2838_s0 + $0x720] sm:$0xff]  ;;  %v237_v63 = vld [vmem:[%s2838_s0 + $0x728] sm:$0xff]  ;;  %v995_v0 = vadd.f32 0.25, %v739_v52  ;;  %v996_v1 = vadd.f32 0.25, %v740_v53 }
  0xbb   :  { %v997_v2 = vadd.f32 0.25, %v741_v54  ;;  %v743_v3 = vmul.f32 1.5, %v487_v55  ;;  %v238_v4 = vld [vmem:[%s2838_s0 + $0x730] sm:$0xff]  ;;  %1248 = vst [vmem:[%s2839_s1 + $0x6c0] sm:$0xff] %v992_v58  ;;  %1249 = vst [vmem:[%s2839_s1 + $0x6c8] sm:$0xff] %v993_v59  ;;  %v488_v6 = vmax.f32 %v232_v50, 0.0 }
  0xbc   :  { %1250 = vst [vmem:[%s2839_s1 + $0x6d0] sm:$0xff] %v994_v60  ;;  %v998_v5 = vadd.f32 0.25, %v742_v61  ;;  %v489_v7 = vmax.f32 %v233_v51, 0.0  ;;  %v490_v8 = vmax.f32 %v234_v56, 0.0  ;;  %v239_v9 = vld [vmem:[%s2838_s0 + $0x738] sm:$0xff]  ;;  %1251 = vst [vmem:[%s2839_s1 + $0x6d8] sm:$0xff] %v995_v0 }
  0xbd   :  { %1252 = vst [vmem:[%s2839_s1 + $0x6e0] sm:$0xff] %v996_v1  ;;  %1253 = vst [vmem:[%s2839_s1 + $0x6e8] sm:$0xff] %v997_v2  ;;  %v999_v10 = vadd.f32 0.25, %v743_v3  ;;  %v491_v11 = vmax.f32 %v235_v57, 0.0  ;;  %v492_v12 = vmax.f32 %v236_v62, 0.0  ;;  %v493_v13 = vmax.f32 %v237_v63, 0.0 }
  0xbe   :  { %1254 = vst [vmem:[%s2839_s1 + $0x6f0] sm:$0xff] %v998_v5  ;;  %v744_v14 = vmul.f32 1.5, %v488_v6  ;;  %v745_v15 = vmul.f32 1.5, %v489_v7  ;;  %v746_v16 = vmul.f32 1.5, %v490_v8  ;;  %v494_v17 = vmax.f32 %v238_v4, 0.0  ;;  %v240_v18 = vld [vmem:[%s2838_s0 + $0x740] sm:$0xff] }
  0xbf   :  { %v241_v19 = vld [vmem:[%s2838_s0 + $0x748] sm:$0xff]  ;;  %1255 = vst [vmem:[%s2839_s1 + $0x6f8] sm:$0xff] %v999_v10  ;;  %v747_v20 = vmul.f32 1.5, %v491_v11  ;;  %v748_v21 = vmul.f32 1.5, %v492_v12  ;;  %v749_v22 = vmul.f32 1.5, %v493_v13  ;;  %v495_v23 = vmax.f32 %v239_v9, 0.0 }
  0xc0   :  { %v242_v24 = vld [vmem:[%s2838_s0 + $0x750] sm:$0xff]  ;;  %v243_v25 = vld [vmem:[%s2838_s0 + $0x758] sm:$0xff]  ;;  %v1000_v26 = vadd.f32 0.25, %v744_v14  ;;  %v1001_v27 = vadd.f32 0.25, %v745_v15  ;;  %v1002_v28 = vadd.f32 0.25, %v746_v16  ;;  %v750_v29 = vmul.f32 1.5, %v494_v17 }
  0xc1   :  { %v244_v30 = vld [vmem:[%s2838_s0 + $0x760] sm:$0xff]  ;;  %v245_v31 = vld [vmem:[%s2838_s0 + $0x768] sm:$0xff]  ;;  %v1003_v32 = vadd.f32 0.25, %v747_v20  ;;  %v1004_v33 = vadd.f32 0.25, %v748_v21  ;;  %v1005_v34 = vadd.f32 0.25, %v749_v22  ;;  %v751_v35 = vmul.f32 1.5, %v495_v23 }
  0xc2   :  { %v246_v36 = vld [vmem:[%s2838_s0 + $0x770] sm:$0xff]  ;;  %1256 = vst [vmem:[%s2839_s1 + $0x700] sm:$0xff] %v1000_v26  ;;  %1257 = vst [vmem:[%s2839_s1 + $0x708] sm:$0xff] %v1001_v27  ;;  %v1006_v37 = vadd.f32 0.25, %v750_v29  ;;  %v496_v38 = vmax.f32 %v240_v18, 0.0  ;;  %v497_v39 = vmax.f32 %v241_v19, 0.0 }
  0xc3   :  { %1258 = vst [vmem:[%s2839_s1 + $0x710] sm:$0xff] %v1002_v28  ;;  %v498_v40 = vmax.f32 %v242_v24, 0.0  ;;  %v247_v41 = vld [vmem:[%s2838_s0 + $0x778] sm:$0xff]  ;;  %1259 = vst [vmem:[%s2839_s1 + $0x718] sm:$0xff] %v1003_v32  ;;  %v1007_v42 = vadd.f32 0.25, %v751_v35  ;;  %v499_v43 = vmax.f32 %v243_v25, 0.0 }
  0xc4   :  { %1260 = vst [vmem:[%s2839_s1 + $0x720] sm:$0xff] %v1004_v33  ;;  %1261 = vst [vmem:[%s2839_s1 + $0x728] sm:$0xff] %v1005_v34  ;;  %v500_v44 = vmax.f32 %v244_v30, 0.0  ;;  %v501_v45 = vmax.f32 %v245_v31, 0.0  ;;  %v752_v46 = vmul.f32 1.5, %v496_v38  ;;  %v753_v47 = vmul.f32 1.5, %v497_v39 }
  0xc5   :  { %1262 = vst [vmem:[%s2839_s1 + $0x730] sm:$0xff] %v1006_v37  ;;  %v754_v48 = vmul.f32 1.5, %v498_v40  ;;  %v502_v49 = vmax.f32 %v246_v36, 0.0  ;;  %v248_v50 = vld [vmem:[%s2838_s0 + $0x780] sm:$0xff]  ;;  %v249_v51 = vld [vmem:[%s2838_s0 + $0x788] sm:$0xff]  ;;  %1263 = vst [vmem:[%s2839_s1 + $0x738] sm:$0xff] %v1007_v42 }
  0xc6   :  { %v755_v52 = vmul.f32 1.5, %v499_v43  ;;  %v756_v53 = vmul.f32 1.5, %v500_v44  ;;  %v757_v54 = vmul.f32 1.5, %v501_v45  ;;  %v503_v55 = vmax.f32 %v247_v41, 0.0  ;;  %v250_v56 = vld [vmem:[%s2838_s0 + $0x790] sm:$0xff]  ;;  %v251_v57 = vld [vmem:[%s2838_s0 + $0x798] sm:$0xff] }
  0xc7   :  { %v1008_v58 = vadd.f32 0.25, %v752_v46  ;;  %v1009_v59 = vadd.f32 0.25, %v753_v47  ;;  %v1010_v60 = vadd.f32 0.25, %v754_v48  ;;  %v758_v61 = vmul.f32 1.5, %v502_v49  ;;  %v252_v62 = vld [vmem:[%s2838_s0 + $0x7a0] sm:$0xff]  ;;  %v253_v63 = vld [vmem:[%s2838_s0 + $0x7a8] sm:$0xff] }
  0xc8   :  { %v1011_v0 = vadd.f32 0.25, %v755_v52  ;;  %v1012_v1 = vadd.f32 0.25, %v756_v53  ;;  %v1013_v2 = vadd.f32 0.25, %v757_v54  ;;  %v759_v3 = vmul.f32 1.5, %v503_v55  ;;  %v254_v4 = vld [vmem:[%s2838_s0 + $0x7b0] sm:$0xff]  ;;  %v255_v9 = vld [vmem:[%s2838_s0 + $0x7b8] sm:$0xff] }
  0xc9   :  { %1264 = vst [vmem:[%s2839_s1 + $0x740] sm:$0xff] %v1008_v58  ;;  %1265 = vst [vmem:[%s2839_s1 + $0x748] sm:$0xff] %v1009_v59  ;;  %v1014_v5 = vadd.f32 0.25, %v758_v61  ;;  %v504_v6 = vmax.f32 %v248_v50, 0.0  ;;  %v505_v7 = vmax.f32 %v249_v51, 0.0  ;;  %v506_v8 = vmax.f32 %v250_v56, 0.0 }
  0xca   :  { %1266 = vst [vmem:[%s2839_s1 + $0x750] sm:$0xff] %v1010_v60  ;;  %1267 = vst [vmem:[%s2839_s1 + $0x758] sm:$0xff] %v1011_v0  ;;  %v1015_v10 = vadd.f32 0.25, %v759_v3  ;;  %v507_v11 = vmax.f32 %v251_v57, 0.0  ;;  %v508_v12 = vmax.f32 %v252_v62, 0.0  ;;  %v509_v13 = vmax.f32 %v253_v63, 0.0 }
  0xcb   :  { %1268 = vst [vmem:[%s2839_s1 + $0x760] sm:$0xff] %v1012_v1  ;;  %1269 = vst [vmem:[%s2839_s1 + $0x768] sm:$0xff] %v1013_v2  ;;  %v760_v14 = vmul.f32 1.5, %v504_v6  ;;  %v761_v15 = vmul.f32 1.5, %v505_v7  ;;  %v762_v16 = vmul.f32 1.5, %v506_v8  ;;  %v510_v17 = vmax.f32 %v254_v4, 0.0 }
  0xcc   :  { %1270 = vst [vmem:[%s2839_s1 + $0x770] sm:$0xff] %v1014_v5  ;;  %v256_v18 = vld [vmem:[%s2838_s0 + $0x7c0] sm:$0xff]  ;;  %v257_v19 = vld [vmem:[%s2838_s0 + $0x7c8] sm:$0xff]  ;;  %1271 = vst [vmem:[%s2839_s1 + $0x778] sm:$0xff] %v1015_v10  ;;  %v763_v20 = vmul.f32 1.5, %v507_v11  ;;  %v764_v21 = vmul.f32 1.5, %v508_v12 }
  0xcd   :  { %v765_v22 = vmul.f32 1.5, %v509_v13  ;;  %v511_v23 = vmax.f32 %v255_v9, 0.0  ;;  %v258_v24 = vld [vmem:[%s2838_s0 + $0x7d0] sm:$0xff]  ;;  %v259_v25 = vld [vmem:[%s2838_s0 + $0x7d8] sm:$0xff]  ;;  %v1016_v26 = vadd.f32 0.25, %v760_v14  ;;  %v1017_v27 = vadd.f32 0.25, %v761_v15 }
  0xce   :  { %v1018_v28 = vadd.f32 0.25, %v762_v16  ;;  %v766_v29 = vmul.f32 1.5, %v510_v17  ;;  %v260_v30 = vld [vmem:[%s2838_s0 + $0x7e0] sm:$0xff]  ;;  %v261_v31 = vld [vmem:[%s2838_s0 + $0x7e8] sm:$0xff]  ;;  %v1019_v32 = vadd.f32 0.25, %v763_v20  ;;  %v1020_v33 = vadd.f32 0.25, %v764_v21 }
  0xcf   :  { %v1021_v34 = vadd.f32 0.25, %v765_v22  ;;  %v767_v35 = vmul.f32 1.5, %v511_v23  ;;  %v262_v36 = vld [vmem:[%s2838_s0 + $0x7f0] sm:$0xff]  ;;  %1272 = vst [vmem:[%s2839_s1 + $0x780] sm:$0xff] %v1016_v26  ;;  %1273 = vst [vmem:[%s2839_s1 + $0x788] sm:$0xff] %v1017_v27  ;;  %v512_v38 = vmax.f32 %v256_v18, 0.0 }
  0xd0   :  { %1274 = vst [vmem:[%s2839_s1 + $0x790] sm:$0xff] %v1018_v28  ;;  %v1022_v37 = vadd.f32 0.25, %v766_v29  ;;  %v513_v39 = vmax.f32 %v257_v19, 0.0  ;;  %v514_v40 = vmax.f32 %v258_v24, 0.0  ;;  %v263_v41 = vld [vmem:[%s2838_s0 + $0x7f8] sm:$0xff]  ;;  %1275 = vst [vmem:[%s2839_s1 + $0x798] sm:$0xff] %v1019_v32 }
  0xd1   :  { %1276 = vst [vmem:[%s2839_s1 + $0x7a0] sm:$0xff] %v1020_v33  ;;  %1277 = vst [vmem:[%s2839_s1 + $0x7a8] sm:$0xff] %v1021_v34  ;;  %v1023_v42 = vadd.f32 0.25, %v767_v35  ;;  %v515_v43 = vmax.f32 %v259_v25, 0.0  ;;  %v516_v44 = vmax.f32 %v260_v30, 0.0  ;;  %v517_v45 = vmax.f32 %v261_v31, 0.0 }
  0xd2   :  { %1278 = vst [vmem:[%s2839_s1 + $0x7b0] sm:$0xff] %v1022_v37  ;;  %v768_v46 = vmul.f32 1.5, %v512_v38  ;;  %v769_v47 = vmul.f32 1.5, %v513_v39  ;;  %v770_v48 = vmul.f32 1.5, %v514_v40  ;;  %v518_v49 = vmax.f32 %v262_v36, 0.0 }
  0xd3   :  { %1279 = vst [vmem:[%s2839_s1 + $0x7b8] sm:$0xff] %v1023_v42  ;;  %v771_v50 = vmul.f32 1.5, %v515_v43  ;;  %v772_v51 = vmul.f32 1.5, %v516_v44  ;;  %v773_v52 = vmul.f32 1.5, %v517_v45  ;;  %v519_v53 = vmax.f32 %v263_v41, 0.0 }
  0xd4   :  { %v1024_v54 = vadd.f32 0.25, %v768_v46  ;;  %v1025_v55 = vadd.f32 0.25, %v769_v47  ;;  %v1026_v56 = vadd.f32 0.25, %v770_v48  ;;  %v774_v57 = vmul.f32 1.5, %v518_v49 }
  0xd5   :  { %v1027_v58 = vadd.f32 0.25, %v771_v50  ;;  %v1028_v59 = vadd.f32 0.25, %v772_v51  ;;  %v1029_v60 = vadd.f32 0.25, %v773_v52  ;;  %v775_v61 = vmul.f32 1.5, %v519_v53 }
  0xd6   :  { %1280 = vst [vmem:[%s2839_s1 + $0x7c0] sm:$0xff] %v1024_v54  ;;  %1281 = vst [vmem:[%s2839_s1 + $0x7c8] sm:$0xff] %v1025_v55  ;;  %v1030_v62 = vadd.f32 0.25, %v774_v57 }
  0xd7   :  { %1282 = vst [vmem:[%s2839_s1 + $0x7d0] sm:$0xff] %v1026_v56  ;;  %1283 = vst [vmem:[%s2839_s1 + $0x7d8] sm:$0xff] %v1027_v58  ;;  %v1031_v63 = vadd.f32 0.25, %v775_v61 }
  0xd8   :  { %1284 = vst [vmem:[%s2839_s1 + $0x7e0] sm:$0xff] %v1028_v59  ;;  %1285 = vst [vmem:[%s2839_s1 + $0x7e8] sm:$0xff] %v1029_v60 }
  0xd9   :  { %1286 = vst [vmem:[%s2839_s1 + $0x7f0] sm:$0xff] %v1030_v62  ;;  %1287 = vst [vmem:[%s2839_s1 + $0x7f8] sm:$0xff] %v1031_v63 }

</bundles_post_ra>
